<compile_context>
chip_gen: v6e
topology: v6e:2x2x1
jax: 0.10.0
libtpu: 0.0.40
codegen_flags: <defaults>
</compile_context>

<pallas_src>
import jax
import jax.numpy as jnp
from jax.experimental import pallas as pl
from jax.experimental.pallas import tpu as pltpu

# ----------------------------- config (small synthetic shapes) ---------------
B = 2             # batch
T = 8             # question sequence length
VOCAB = 50        # vocabulary size (synthetic)
EMB = 620         # embedding_dim (hard-coded to 620 in Mlb.__init__)
DIM_Q = 32        # opt['dim_q']   (GRU hidden)
DIM_V = 32        # opt['dim_v']   (visual feature vector size)
DIM_H = 32        # opt['dim_h']
NUM_CLASSES = 16  # len(vocab_answers)

# ----------------------------- TPU-friendly padded sizes ---------------------
B_PAD = ((B + 7) // 8) * 8              # sublane granule for the batch rows
VPAD = ((VOCAB + 127) // 128) * 128     # lane granule for the one-hot / table
GPAD = 128                              # each GRU gate starts on a 128-lane boundary
TB = T * B_PAD                          # rows of the time-major gi slab
assert DIM_Q <= GPAD and VOCAB <= VPAD and B <= B_PAD
assert B_PAD & (B_PAD - 1) == 0         # power of two (bitwise modulo below)


# ----------------------------- fused forward kernel --------------------------
def mlb_noatt_kernel(tok_ref, v_ref,
                     gi_tab_ref, b_gi_ref, w_hh_ref, b_gh_ref,
                     w_v_ref, b_v_ref, w_q_ref, b_q_ref, w_c_ref, b_c_ref,
                     out_ref):
    f32 = jnp.float32
    tok = tok_ref[...]                                              # [TB, 1] int32 (time-major)

    # ---- embedding + input->hidden matmul, pre-folded into gi_table ---------
    # gather via one-hot matmul: gi[t*8+b, :] = gi_table[tok[b, t], :] + b_gi
    vocab_iota = jax.lax.broadcasted_iota(jnp.int32, (TB, VPAD), 1)
    onehot = (tok == vocab_iota).astype(f32)                        # [TB, VPAD]
    gi = jnp.dot(onehot, gi_tab_ref[...],
                 preferred_element_type=f32) + b_gi_ref[...]        # [TB, 3*GPAD]

    # ---- process_lengths in-kernel: lengths[b] = #nonzero tokens of row b ----
    row = jax.lax.broadcasted_iota(jnp.int32, (B_PAD, TB), 0)
    col = jax.lax.broadcasted_iota(jnp.int32, (B_PAD, TB), 1)
    gather_b = (jnp.bitwise_and(col, B_PAD - 1) == row).astype(f32)  # [B_PAD, TB]
    nz = jnp.broadcast_to((tok != 0).astype(f32), (TB, GPAD))        # [TB, GPAD]
    len_b = jnp.dot(gather_b, nz, preferred_element_type=f32)        # [B_PAD, GPAD]
    sel_masks = [len_b == float(t + 1) for t in range(T)]            # hoisted select masks

    # ---- GRU recurrence (statically unrolled, 128-lane padded hidden state) --
    w_hh = w_hh_ref[...]          # [GPAD, 3*GPAD]   gates at lane offsets 0/128/256
    b_gh = b_gh_ref[...]          # [1, 3*GPAD]      only b_hh_n (must stay inside r*(.))
    h = jnp.zeros((B_PAD, GPAD), f32)
    sel = jnp.zeros((B_PAD, GPAD), f32)
    # TODO(synk): could keep w_hh resident in MXU weight registers across the 8
    # serial steps via pltpu.matmul_push_rhs/matmul_acc_lhs/matmul_pop; jnp.dot
    # is kept here for lowering robustness.
    for t in range(T):                                   # static unroll (T const)
        gi_t = gi[t * B_PAD:(t + 1) * B_PAD, :]          # 8-sublane-aligned view
        gh = jnp.dot(h, w_hh, preferred_element_type=f32) + b_gh
        r = jax.nn.sigmoid(gi_t[:, 0:GPAD] + gh[:, 0:GPAD])
        z = jax.nn.sigmoid(gi_t[:, GPAD:2 * GPAD] + gh[:, GPAD:2 * GPAD])
        n = jnp.tanh(gi_t[:, 2 * GPAD:3 * GPAD] + r * gh[:, 2 * GPAD:3 * GPAD])
        h = (1.0 - z) * n + z * h
        sel = jnp.where(sel_masks[t], h, sel)            # select_last
    # NOTE: rows with length == 0 keep sel = 0 (PyTorch select_last would index
    # step -1); synthetic inputs always have length >= 1.

    # ---- forward_fusion + _classif (dropouts are identity in eval) ----------
    x_v = jnp.tanh(jnp.dot(v_ref[...], w_v_ref[...],
                           preferred_element_type=f32) + b_v_ref[...])      # [B, DIM_H]
    x_qf = jnp.tanh(jnp.dot(sel, w_q_ref[...],
                            preferred_element_type=f32) + b_q_ref[...])     # [B_PAD, DIM_H]
    x_mm = x_qf[0:B, :] * x_v                                               # [B, DIM_H]
    out_ref[...] = jnp.dot(jnp.tanh(x_mm), w_c_ref[...],
                           preferred_element_type=f32) + b_c_ref[...]       # [B, CLS]


def _cost_estimate():
    flops = (2 * TB * VPAD * 3 * GPAD            # one-hot gather matmul
             + 2 * B_PAD * TB * GPAD             # lengths matmul
             + T * 2 * B_PAD * GPAD * 3 * GPAD   # recurrence hidden matmuls
             + T * 10 * B_PAD * 3 * GPAD         # gate elementwise (approx)
             + 2 * B * DIM_V * DIM_H
             + 2 * B_PAD * GPAD * DIM_H
             + 2 * B * DIM_H * NUM_CLASSES)
    transcendentals = T * 3 * B_PAD * GPAD + (2 * B + B_PAD) * DIM_H
    bytes_accessed = 4 * (TB + B * DIM_V
                          + VPAD * 3 * GPAD + 3 * GPAD        # gi_tab, b_gi
                          + GPAD * 3 * GPAD + 3 * GPAD        # w_hh, b_gh
                          + DIM_V * DIM_H + DIM_H
                          + GPAD * DIM_H + DIM_H
                          + DIM_H * NUM_CLASSES + NUM_CLASSES
                          + B * NUM_CLASSES)
    return pl.CostEstimate(flops=flops, transcendentals=transcendentals,
                           bytes_accessed=bytes_accessed)


@jax.jit
def mlb_noatt_forward(input_v, input_q, kp):
    # Only host-side glue left: a 64-int layout shuffle of the token ids into
    # the time-major, batch-padded column the kernel consumes (no embedding
    # slab, no gather, no lengths op -- those all run inside the kernel now).
    tok_tm = jnp.zeros((T, B_PAD), jnp.int32).at[:, :B].set(input_q.astype(jnp.int32).T)
    tok_col = tok_tm.reshape(TB, 1)

    vmem = pl.BlockSpec(memory_space=pltpu.MemorySpace.VMEM)
    return pl.pallas_call(
        mlb_noatt_kernel,
        out_shape=jax.ShapeDtypeStruct((B, NUM_CLASSES), jnp.float32),
        in_specs=[vmem] * 12,
        out_specs=vmem,
        cost_estimate=_cost_estimate(),
    )(tok_col, input_v,
      kp["gi_tab"], kp["b_gi"], kp["w_hh"], kp["b_gh"],
      kp["w_v"], kp["b_v"], kp["w_q"], kp["b_q"], kp["w_c"], kp["b_c"])


# ----------------------------- parameters -----------------------------------
def init_params(key):
    ks = jax.random.split(key, 11)
    s = 0.05

    def nrm(k, shape):
        return jax.random.normal(k, shape, jnp.float32) * s

    emb_table = nrm(ks[0], (VOCAB, EMB)).at[0].set(0.0)     # padding_idx = 0
    return dict(
        emb_table=emb_table,
        w_ih=nrm(ks[1], (EMB, 3 * DIM_Q)),                  # packed gates (r|z|n)
        w_hh=nrm(ks[2], (DIM_Q, 3 * DIM_Q)),
        b_ih=nrm(ks[3], (1, 3 * DIM_Q)),
        b_hh=nrm(ks[4], (1, 3 * DIM_Q)),
        w_v=nrm(ks[5], (DIM_V, DIM_H)),                     # linear_v
        b_v=nrm(ks[6], (1, DIM_H)),
        w_q=nrm(ks[7], (DIM_Q, DIM_H)),                     # linear_q
        b_q=nrm(ks[8], (1, DIM_H)),
        w_c=nrm(ks[9], (DIM_H, NUM_CLASSES)),               # linear_classif
        b_c=nrm(ks[10], (1, NUM_CLASSES)),
    )


def prepare_kernel_params(p):
    """One-time parameter prep: inference-time algebraic folds + TPU packing."""
    f32 = jnp.float32
    D = DIM_Q

    # Pre-fold the embedding table into the input->hidden GRU weights
    # (valid for inference):  gi_table[v] = emb_table[v] @ w_ih
    gi_raw = jnp.dot(p["emb_table"], p["w_ih"])             # [VOCAB, 3*D]

    gi_tab = jnp.zeros((VPAD, 3 * GPAD), f32)
    w_hh_p = jnp.zeros((GPAD, 3 * GPAD), f32)
    b_gi = jnp.zeros((1, 3 * GPAD), f32)
    b_gh = jnp.zeros((1, 3 * GPAD), f32)
    for g in range(3):                                       # r | z | n -> lane offsets 0/128/256
        gi_tab = gi_tab.at[:VOCAB, g * GPAD:g * GPAD + D].set(gi_raw[:, g * D:(g + 1) * D])
        w_hh_p = w_hh_p.at[:D, g * GPAD:g * GPAD + D].set(p["w_hh"][:, g * D:(g + 1) * D])
        bias = p["b_ih"][0, g * D:(g + 1) * D]
        if g < 2:                                            # fold b_hh_r / b_hh_z into input bias
            bias = bias + p["b_hh"][0, g * D:(g + 1) * D]
        b_gi = b_gi.at[0, g * GPAD:g * GPAD + D].set(bias)
    b_gh = b_gh.at[0, 2 * GPAD:2 * GPAD + D].set(p["b_hh"][0, 2 * D:3 * D])  # b_hh_n stays in r*(.)

    w_q_p = jnp.zeros((GPAD, DIM_H), f32).at[:D, :].set(p["w_q"])
    return dict(gi_tab=gi_tab, b_gi=b_gi, w_hh=w_hh_p, b_gh=b_gh,
                w_v=p["w_v"], b_v=p["b_v"], w_q=w_q_p, b_q=p["b_q"],
                w_c=p["w_c"], b_c=p["b_c"])


# ----------------------------- pure-JAX reference (raw params) ---------------
def reference_forward(input_v, input_q, p):
    D = DIM_Q
    lengths = (T - jnp.sum(input_q == 0, axis=1)).astype(jnp.int32)
    emb = p["emb_table"][input_q]                           # [B, T, EMB]

    h = jnp.zeros((B, D), jnp.float32)
    sel = jnp.zeros((B, D), jnp.float32)
    for t in range(T):
        x_t = emb[:, t, :]
        gi = x_t @ p["w_ih"] + p["b_ih"]
        gh = h @ p["w_hh"] + p["b_hh"]
        r = jax.nn.sigmoid(gi[:, :D] + gh[:, :D])
        z = jax.nn.sigmoid(gi[:, D:2 * D] + gh[:, D:2 * D])
        n = jnp.tanh(gi[:, 2 * D:] + r * gh[:, 2 * D:])
        h = (1.0 - z) * n + z * h
        sel = jnp.where((lengths == t + 1)[:, None], h, sel)
    x_q = sel

    x_v = jnp.tanh(input_v @ p["w_v"] + p["b_v"])
    x_qf = jnp.tanh(x_q @ p["w_q"] + p["b_q"])
    x_mm = x_qf * x_v
    return jnp.tanh(x_mm) @ p["w_c"] + p["b_c"]


# ----------------------------- main ------------------------------------------
if __name__ == "__main__":
    key = jax.random.PRNGKey(0)
    k_param, k_v, k_q = jax.random.split(key, 3)

    raw_params = init_params(k_param)
    kernel_params = prepare_kernel_params(raw_params)       # one-time prep

    # visual feature vector [B, dim_v]
    input_v = jax.random.normal(k_v, (B, DIM_V), jnp.float32)

    # question token ids [B, T] with trailing padding (token 0)
    tokens = jax.random.randint(k_q, (B, T), 1, VOCAB, dtype=jnp.int32)
    seq_lens = jnp.array([6, 8], dtype=jnp.int32)
    input_q = jnp.where(jnp.arange(T)[None, :] < seq_lens[:, None], tokens, 0)

    logits = jax.block_until_ready(mlb_noatt_forward(input_v, input_q, kernel_params))
    ref = jax.block_until_ready(reference_forward(input_v, input_q, raw_params))

    assert logits.shape == (B, NUM_CLASSES)
    assert bool(jnp.all(jnp.isfinite(logits)))
    assert bool(jnp.allclose(logits, ref, rtol=1e-3, atol=1e-3)), (
        f"max abs diff {float(jnp.max(jnp.abs(logits - ref)))}")

    print("KERNEL_OK")
</pallas_src>

<mosaic_0001>
module attributes {stable_mosaic.version = 11 : i64} {
  func.func @mlb_noatt_kernel(%arg0: memref<64x1xi32, #tpu.memory_space<vmem>>, %arg1: memref<2x32xf32, #tpu.memory_space<vmem>>, %arg2: memref<128x384xf32, #tpu.memory_space<vmem>>, %arg3: memref<1x384xf32, #tpu.memory_space<vmem>>, %arg4: memref<128x384xf32, #tpu.memory_space<vmem>>, %arg5: memref<1x384xf32, #tpu.memory_space<vmem>>, %arg6: memref<32x32xf32, #tpu.memory_space<vmem>>, %arg7: memref<1x32xf32, #tpu.memory_space<vmem>>, %arg8: memref<128x32xf32, #tpu.memory_space<vmem>>, %arg9: memref<1x32xf32, #tpu.memory_space<vmem>>, %arg10: memref<32x16xf32, #tpu.memory_space<vmem>>, %arg11: memref<1x16xf32, #tpu.memory_space<vmem>>, %arg12: memref<2x16xf32, #tpu.memory_space<vmem>>) attributes {dimension_semantics = [], scalar_prefetch = 0 : i64, scratch_operands = 0 : i64, tpu.core_type = #tpu.core_type<tc>} {
    %c0 = arith.constant 0 : index
    %c0_0 = arith.constant 0 : index
    %0 = vector.load %arg0[%c0, %c0_0] : memref<64x1xi32, #tpu.memory_space<vmem>>, vector<64x1xi32>
    %1 = tpu.iota {dimensions = array<i32: 1>} : vector<64x128xi32>
    %2 = vector.broadcast %0 : vector<64x1xi32> to vector<64x128xi32>
    %3 = arith.cmpi eq, %2, %1 : vector<64x128xi32>
    %4 = arith.extui %3 : vector<64x128xi1> to vector<64x128xi32>
    %5 = arith.sitofp %4 : vector<64x128xi32> to vector<64x128xf32>
    %c0_1 = arith.constant 0 : index
    %c0_2 = arith.constant 0 : index
    %6 = vector.load %arg2[%c0_1, %c0_2] : memref<128x384xf32, #tpu.memory_space<vmem>>, vector<128x384xf32>
    %cst = arith.constant dense<0.000000e+00> : vector<64x384xf32>
    %7 = tpu.matmul %5, %6, %cst {dimension_numbers = #tpu.dot_dimension_numbers<[1], [0], [0], [1], [0, 0, 1, 1], [], []>} : vector<64x128xf32>, vector<128x384xf32>, vector<64x384xf32> -> vector<64x384xf32>
    %c0_3 = arith.constant 0 : index
    %c0_4 = arith.constant 0 : index
    %8 = vector.load %arg3[%c0_3, %c0_4] : memref<1x384xf32, #tpu.memory_space<vmem>>, vector<1x384xf32>
    %9 = vector.broadcast %8 : vector<1x384xf32> to vector<64x384xf32>
    %10 = arith.addf %7, %9 : vector<64x384xf32>
    %11 = tpu.iota {dimensions = array<i32: 0>} : vector<8x64xi32>
    %12 = tpu.iota {dimensions = array<i32: 1>} : vector<8x64xi32>
    %c7_i32 = arith.constant 7 : i32
    %13 = vector.broadcast %c7_i32 : i32 to vector<8x64xi32>
    %14 = arith.andi %12, %13 : vector<8x64xi32>
    %15 = arith.cmpi eq, %14, %11 : vector<8x64xi32>
    %16 = arith.extui %15 : vector<8x64xi1> to vector<8x64xi32>
    %17 = arith.sitofp %16 : vector<8x64xi32> to vector<8x64xf32>
    %c0_i32 = arith.constant 0 : i32
    %18 = vector.broadcast %c0_i32 : i32 to vector<64x1xi32>
    %19 = arith.cmpi ne, %0, %18 : vector<64x1xi32>
    %20 = arith.extui %19 : vector<64x1xi1> to vector<64x1xi32>
    %21 = arith.sitofp %20 : vector<64x1xi32> to vector<64x1xf32>
    %22 = vector.shape_cast %21 : vector<64x1xf32> to vector<64x1xf32>
    %23 = vector.broadcast %22 : vector<64x1xf32> to vector<64x128xf32>
    %cst_5 = arith.constant dense<0.000000e+00> : vector<8x128xf32>
    %24 = tpu.matmul %17, %23, %cst_5 {dimension_numbers = #tpu.dot_dimension_numbers<[1], [0], [0], [1], [0, 0, 1, 1], [], []>} : vector<8x64xf32>, vector<64x128xf32>, vector<8x128xf32> -> vector<8x128xf32>
    %cst_6 = arith.constant 1.000000e+00 : f32
    %25 = vector.broadcast %cst_6 : f32 to vector<8x128xf32>
    %26 = arith.cmpf oeq, %24, %25 : vector<8x128xf32>
    %cst_7 = arith.constant 2.000000e+00 : f32
    %27 = vector.broadcast %cst_7 : f32 to vector<8x128xf32>
    %28 = arith.cmpf oeq, %24, %27 : vector<8x128xf32>
    %cst_8 = arith.constant 3.000000e+00 : f32
    %29 = vector.broadcast %cst_8 : f32 to vector<8x128xf32>
    %30 = arith.cmpf oeq, %24, %29 : vector<8x128xf32>
    %cst_9 = arith.constant 4.000000e+00 : f32
    %31 = vector.broadcast %cst_9 : f32 to vector<8x128xf32>
    %32 = arith.cmpf oeq, %24, %31 : vector<8x128xf32>
    %cst_10 = arith.constant 5.000000e+00 : f32
    %33 = vector.broadcast %cst_10 : f32 to vector<8x128xf32>
    %34 = arith.cmpf oeq, %24, %33 : vector<8x128xf32>
    %cst_11 = arith.constant 6.000000e+00 : f32
    %35 = vector.broadcast %cst_11 : f32 to vector<8x128xf32>
    %36 = arith.cmpf oeq, %24, %35 : vector<8x128xf32>
    %cst_12 = arith.constant 7.000000e+00 : f32
    %37 = vector.broadcast %cst_12 : f32 to vector<8x128xf32>
    %38 = arith.cmpf oeq, %24, %37 : vector<8x128xf32>
    %cst_13 = arith.constant 8.000000e+00 : f32
    %39 = vector.broadcast %cst_13 : f32 to vector<8x128xf32>
    %40 = arith.cmpf oeq, %24, %39 : vector<8x128xf32>
    %c0_14 = arith.constant 0 : index
    %c0_15 = arith.constant 0 : index
    %41 = vector.load %arg4[%c0_14, %c0_15] : memref<128x384xf32, #tpu.memory_space<vmem>>, vector<128x384xf32>
    %c0_16 = arith.constant 0 : index
    %c0_17 = arith.constant 0 : index
    %42 = vector.load %arg5[%c0_16, %c0_17] : memref<1x384xf32, #tpu.memory_space<vmem>>, vector<1x384xf32>
    %cst_18 = arith.constant 0.000000e+00 : f32
    %43 = vector.broadcast %cst_18 : f32 to vector<8x128xf32>
    %cst_19 = arith.constant 0.000000e+00 : f32
    %44 = vector.broadcast %cst_19 : f32 to vector<8x128xf32>
    %45 = vector.extract_strided_slice %10 {offsets = [0, 0], sizes = [8, 384], strides = [1, 1]} : vector<64x384xf32> to vector<8x384xf32>
    %cst_20 = arith.constant dense<0.000000e+00> : vector<8x384xf32>
    %46 = tpu.matmul %43, %41, %cst_20 {dimension_numbers = #tpu.dot_dimension_numbers<[1], [0], [0], [1], [0, 0, 1, 1], [], []>} : vector<8x128xf32>, vector<128x384xf32>, vector<8x384xf32> -> vector<8x384xf32>
    %47 = vector.broadcast %42 : vector<1x384xf32> to vector<8x384xf32>
    %48 = arith.addf %46, %47 : vector<8x384xf32>
    %49 = vector.extract_strided_slice %45 {offsets = [0, 0], sizes = [8, 128], strides = [1, 1]} : vector<8x384xf32> to vector<8x128xf32>
    %50 = vector.extract_strided_slice %48 {offsets = [0, 0], sizes = [8, 128], strides = [1, 1]} : vector<8x384xf32> to vector<8x128xf32>
    %51 = arith.addf %49, %50 : vector<8x128xf32>
    %52 = arith.negf %51 : vector<8x128xf32>
    %53 = math.exp %52 : vector<8x128xf32>
    %cst_21 = arith.constant 1.000000e+00 : f32
    %54 = vector.broadcast %cst_21 : f32 to vector<8x128xf32>
    %55 = arith.addf %54, %53 : vector<8x128xf32>
    %56 = arith.divf %54, %55 : vector<8x128xf32>
    %57 = vector.extract_strided_slice %45 {offsets = [0, 128], sizes = [8, 128], strides = [1, 1]} : vector<8x384xf32> to vector<8x128xf32>
    %58 = vector.extract_strided_slice %48 {offsets = [0, 128], sizes = [8, 128], strides = [1, 1]} : vector<8x384xf32> to vector<8x128xf32>
    %59 = arith.addf %57, %58 : vector<8x128xf32>
    %60 = arith.negf %59 : vector<8x128xf32>
    %61 = math.exp %60 : vector<8x128xf32>
    %cst_22 = arith.constant 1.000000e+00 : f32
    %62 = vector.broadcast %cst_22 : f32 to vector<8x128xf32>
    %63 = arith.addf %62, %61 : vector<8x128xf32>
    %64 = arith.divf %62, %63 : vector<8x128xf32>
    %65 = vector.extract_strided_slice %45 {offsets = [0, 256], sizes = [8, 128], strides = [1, 1]} : vector<8x384xf32> to vector<8x128xf32>
    %66 = vector.extract_strided_slice %48 {offsets = [0, 256], sizes = [8, 128], strides = [1, 1]} : vector<8x384xf32> to vector<8x128xf32>
    %67 = arith.mulf %56, %66 : vector<8x128xf32>
    %68 = arith.addf %65, %67 : vector<8x128xf32>
    %69 = math.tanh %68 : vector<8x128xf32>
    %cst_23 = arith.constant 1.000000e+00 : f32
    %70 = vector.broadcast %cst_23 : f32 to vector<8x128xf32>
    %71 = arith.subf %70, %64 : vector<8x128xf32>
    %72 = arith.mulf %71, %69 : vector<8x128xf32>
    %73 = arith.mulf %64, %43 : vector<8x128xf32>
    %74 = arith.addf %72, %73 : vector<8x128xf32>
    %75 = arith.select %26, %74, %44 : vector<8x128xi1>, vector<8x128xf32>
    %76 = vector.extract_strided_slice %10 {offsets = [8, 0], sizes = [8, 384], strides = [1, 1]} : vector<64x384xf32> to vector<8x384xf32>
    %cst_24 = arith.constant dense<0.000000e+00> : vector<8x384xf32>
    %77 = tpu.matmul %74, %41, %cst_24 {dimension_numbers = #tpu.dot_dimension_numbers<[1], [0], [0], [1], [0, 0, 1, 1], [], []>} : vector<8x128xf32>, vector<128x384xf32>, vector<8x384xf32> -> vector<8x384xf32>
    %78 = vector.broadcast %42 : vector<1x384xf32> to vector<8x384xf32>
    %79 = arith.addf %77, %78 : vector<8x384xf32>
    %80 = vector.extract_strided_slice %76 {offsets = [0, 0], sizes = [8, 128], strides = [1, 1]} : vector<8x384xf32> to vector<8x128xf32>
    %81 = vector.extract_strided_slice %79 {offsets = [0, 0], sizes = [8, 128], strides = [1, 1]} : vector<8x384xf32> to vector<8x128xf32>
    %82 = arith.addf %80, %81 : vector<8x128xf32>
    %83 = arith.negf %82 : vector<8x128xf32>
    %84 = math.exp %83 : vector<8x128xf32>
    %cst_25 = arith.constant 1.000000e+00 : f32
    %85 = vector.broadcast %cst_25 : f32 to vector<8x128xf32>
    %86 = arith.addf %85, %84 : vector<8x128xf32>
    %87 = arith.divf %85, %86 : vector<8x128xf32>
    %88 = vector.extract_strided_slice %76 {offsets = [0, 128], sizes = [8, 128], strides = [1, 1]} : vector<8x384xf32> to vector<8x128xf32>
    %89 = vector.extract_strided_slice %79 {offsets = [0, 128], sizes = [8, 128], strides = [1, 1]} : vector<8x384xf32> to vector<8x128xf32>
    %90 = arith.addf %88, %89 : vector<8x128xf32>
    %91 = arith.negf %90 : vector<8x128xf32>
    %92 = math.exp %91 : vector<8x128xf32>
    %cst_26 = arith.constant 1.000000e+00 : f32
    %93 = vector.broadcast %cst_26 : f32 to vector<8x128xf32>
    %94 = arith.addf %93, %92 : vector<8x128xf32>
    %95 = arith.divf %93, %94 : vector<8x128xf32>
    %96 = vector.extract_strided_slice %76 {offsets = [0, 256], sizes = [8, 128], strides = [1, 1]} : vector<8x384xf32> to vector<8x128xf32>
    %97 = vector.extract_strided_slice %79 {offsets = [0, 256], sizes = [8, 128], strides = [1, 1]} : vector<8x384xf32> to vector<8x128xf32>
    %98 = arith.mulf %87, %97 : vector<8x128xf32>
    %99 = arith.addf %96, %98 : vector<8x128xf32>
    %100 = math.tanh %99 : vector<8x128xf32>
    %cst_27 = arith.constant 1.000000e+00 : f32
    %101 = vector.broadcast %cst_27 : f32 to vector<8x128xf32>
    %102 = arith.subf %101, %95 : vector<8x128xf32>
    %103 = arith.mulf %102, %100 : vector<8x128xf32>
    %104 = arith.mulf %95, %74 : vector<8x128xf32>
    %105 = arith.addf %103, %104 : vector<8x128xf32>
    %106 = arith.select %28, %105, %75 : vector<8x128xi1>, vector<8x128xf32>
    %107 = vector.extract_strided_slice %10 {offsets = [16, 0], sizes = [8, 384], strides = [1, 1]} : vector<64x384xf32> to vector<8x384xf32>
    %cst_28 = arith.constant dense<0.000000e+00> : vector<8x384xf32>
    %108 = tpu.matmul %105, %41, %cst_28 {dimension_numbers = #tpu.dot_dimension_numbers<[1], [0], [0], [1], [0, 0, 1, 1], [], []>} : vector<8x128xf32>, vector<128x384xf32>, vector<8x384xf32> -> vector<8x384xf32>
    %109 = vector.broadcast %42 : vector<1x384xf32> to vector<8x384xf32>
    %110 = arith.addf %108, %109 : vector<8x384xf32>
    %111 = vector.extract_strided_slice %107 {offsets = [0, 0], sizes = [8, 128], strides = [1, 1]} : vector<8x384xf32> to vector<8x128xf32>
    %112 = vector.extract_strided_slice %110 {offsets = [0, 0], sizes = [8, 128], strides = [1, 1]} : vector<8x384xf32> to vector<8x128xf32>
    %113 = arith.addf %111, %112 : vector<8x128xf32>
    %114 = arith.negf %113 : vector<8x128xf32>
    %115 = math.exp %114 : vector<8x128xf32>
    %cst_29 = arith.constant 1.000000e+00 : f32
    %116 = vector.broadcast %cst_29 : f32 to vector<8x128xf32>
    %117 = arith.addf %116, %115 : vector<8x128xf32>
    %118 = arith.divf %116, %117 : vector<8x128xf32>
    %119 = vector.extract_strided_slice %107 {offsets = [0, 128], sizes = [8, 128], strides = [1, 1]} : vector<8x384xf32> to vector<8x128xf32>
    %120 = vector.extract_strided_slice %110 {offsets = [0, 128], sizes = [8, 128], strides = [1, 1]} : vector<8x384xf32> to vector<8x128xf32>
    %121 = arith.addf %119, %120 : vector<8x128xf32>
    %122 = arith.negf %121 : vector<8x128xf32>
    %123 = math.exp %122 : vector<8x128xf32>
    %cst_30 = arith.constant 1.000000e+00 : f32
    %124 = vector.broadcast %cst_30 : f32 to vector<8x128xf32>
    %125 = arith.addf %124, %123 : vector<8x128xf32>
    %126 = arith.divf %124, %125 : vector<8x128xf32>
    %127 = vector.extract_strided_slice %107 {offsets = [0, 256], sizes = [8, 128], strides = [1, 1]} : vector<8x384xf32> to vector<8x128xf32>
    %128 = vector.extract_strided_slice %110 {offsets = [0, 256], sizes = [8, 128], strides = [1, 1]} : vector<8x384xf32> to vector<8x128xf32>
    %129 = arith.mulf %118, %128 : vector<8x128xf32>
    %130 = arith.addf %127, %129 : vector<8x128xf32>
    %131 = math.tanh %130 : vector<8x128xf32>
    %cst_31 = arith.constant 1.000000e+00 : f32
    %132 = vector.broadcast %cst_31 : f32 to vector<8x128xf32>
    %133 = arith.subf %132, %126 : vector<8x128xf32>
    %134 = arith.mulf %133, %131 : vector<8x128xf32>
    %135 = arith.mulf %126, %105 : vector<8x128xf32>
    %136 = arith.addf %134, %135 : vector<8x128xf32>
    %137 = arith.select %30, %136, %106 : vector<8x128xi1>, vector<8x128xf32>
    %138 = vector.extract_strided_slice %10 {offsets = [24, 0], sizes = [8, 384], strides = [1, 1]} : vector<64x384xf32> to vector<8x384xf32>
    %cst_32 = arith.constant dense<0.000000e+00> : vector<8x384xf32>
    %139 = tpu.matmul %136, %41, %cst_32 {dimension_numbers = #tpu.dot_dimension_numbers<[1], [0], [0], [1], [0, 0, 1, 1], [], []>} : vector<8x128xf32>, vector<128x384xf32>, vector<8x384xf32> -> vector<8x384xf32>
    %140 = vector.broadcast %42 : vector<1x384xf32> to vector<8x384xf32>
    %141 = arith.addf %139, %140 : vector<8x384xf32>
    %142 = vector.extract_strided_slice %138 {offsets = [0, 0], sizes = [8, 128], strides = [1, 1]} : vector<8x384xf32> to vector<8x128xf32>
    %143 = vector.extract_strided_slice %141 {offsets = [0, 0], sizes = [8, 128], strides = [1, 1]} : vector<8x384xf32> to vector<8x128xf32>
    %144 = arith.addf %142, %143 : vector<8x128xf32>
    %145 = arith.negf %144 : vector<8x128xf32>
    %146 = math.exp %145 : vector<8x128xf32>
    %cst_33 = arith.constant 1.000000e+00 : f32
    %147 = vector.broadcast %cst_33 : f32 to vector<8x128xf32>
    %148 = arith.addf %147, %146 : vector<8x128xf32>
    %149 = arith.divf %147, %148 : vector<8x128xf32>
    %150 = vector.extract_strided_slice %138 {offsets = [0, 128], sizes = [8, 128], strides = [1, 1]} : vector<8x384xf32> to vector<8x128xf32>
    %151 = vector.extract_strided_slice %141 {offsets = [0, 128], sizes = [8, 128], strides = [1, 1]} : vector<8x384xf32> to vector<8x128xf32>
    %152 = arith.addf %150, %151 : vector<8x128xf32>
    %153 = arith.negf %152 : vector<8x128xf32>
    %154 = math.exp %153 : vector<8x128xf32>
    %cst_34 = arith.constant 1.000000e+00 : f32
    %155 = vector.broadcast %cst_34 : f32 to vector<8x128xf32>
    %156 = arith.addf %155, %154 : vector<8x128xf32>
    %157 = arith.divf %155, %156 : vector<8x128xf32>
    %158 = vector.extract_strided_slice %138 {offsets = [0, 256], sizes = [8, 128], strides = [1, 1]} : vector<8x384xf32> to vector<8x128xf32>
    %159 = vector.extract_strided_slice %141 {offsets = [0, 256], sizes = [8, 128], strides = [1, 1]} : vector<8x384xf32> to vector<8x128xf32>
    %160 = arith.mulf %149, %159 : vector<8x128xf32>
    %161 = arith.addf %158, %160 : vector<8x128xf32>
    %162 = math.tanh %161 : vector<8x128xf32>
    %cst_35 = arith.constant 1.000000e+00 : f32
    %163 = vector.broadcast %cst_35 : f32 to vector<8x128xf32>
    %164 = arith.subf %163, %157 : vector<8x128xf32>
    %165 = arith.mulf %164, %162 : vector<8x128xf32>
    %166 = arith.mulf %157, %136 : vector<8x128xf32>
    %167 = arith.addf %165, %166 : vector<8x128xf32>
    %168 = arith.select %32, %167, %137 : vector<8x128xi1>, vector<8x128xf32>
    %169 = vector.extract_strided_slice %10 {offsets = [32, 0], sizes = [8, 384], strides = [1, 1]} : vector<64x384xf32> to vector<8x384xf32>
    %cst_36 = arith.constant dense<0.000000e+00> : vector<8x384xf32>
    %170 = tpu.matmul %167, %41, %cst_36 {dimension_numbers = #tpu.dot_dimension_numbers<[1], [0], [0], [1], [0, 0, 1, 1], [], []>} : vector<8x128xf32>, vector<128x384xf32>, vector<8x384xf32> -> vector<8x384xf32>
    %171 = vector.broadcast %42 : vector<1x384xf32> to vector<8x384xf32>
    %172 = arith.addf %170, %171 : vector<8x384xf32>
    %173 = vector.extract_strided_slice %169 {offsets = [0, 0], sizes = [8, 128], strides = [1, 1]} : vector<8x384xf32> to vector<8x128xf32>
    %174 = vector.extract_strided_slice %172 {offsets = [0, 0], sizes = [8, 128], strides = [1, 1]} : vector<8x384xf32> to vector<8x128xf32>
    %175 = arith.addf %173, %174 : vector<8x128xf32>
    %176 = arith.negf %175 : vector<8x128xf32>
    %177 = math.exp %176 : vector<8x128xf32>
    %cst_37 = arith.constant 1.000000e+00 : f32
    %178 = vector.broadcast %cst_37 : f32 to vector<8x128xf32>
    %179 = arith.addf %178, %177 : vector<8x128xf32>
    %180 = arith.divf %178, %179 : vector<8x128xf32>
    %181 = vector.extract_strided_slice %169 {offsets = [0, 128], sizes = [8, 128], strides = [1, 1]} : vector<8x384xf32> to vector<8x128xf32>
    %182 = vector.extract_strided_slice %172 {offsets = [0, 128], sizes = [8, 128], strides = [1, 1]} : vector<8x384xf32> to vector<8x128xf32>
    %183 = arith.addf %181, %182 : vector<8x128xf32>
    %184 = arith.negf %183 : vector<8x128xf32>
    %185 = math.exp %184 : vector<8x128xf32>
    %cst_38 = arith.constant 1.000000e+00 : f32
    %186 = vector.broadcast %cst_38 : f32 to vector<8x128xf32>
    %187 = arith.addf %186, %185 : vector<8x128xf32>
    %188 = arith.divf %186, %187 : vector<8x128xf32>
    %189 = vector.extract_strided_slice %169 {offsets = [0, 256], sizes = [8, 128], strides = [1, 1]} : vector<8x384xf32> to vector<8x128xf32>
    %190 = vector.extract_strided_slice %172 {offsets = [0, 256], sizes = [8, 128], strides = [1, 1]} : vector<8x384xf32> to vector<8x128xf32>
    %191 = arith.mulf %180, %190 : vector<8x128xf32>
    %192 = arith.addf %189, %191 : vector<8x128xf32>
    %193 = math.tanh %192 : vector<8x128xf32>
    %cst_39 = arith.constant 1.000000e+00 : f32
    %194 = vector.broadcast %cst_39 : f32 to vector<8x128xf32>
    %195 = arith.subf %194, %188 : vector<8x128xf32>
    %196 = arith.mulf %195, %193 : vector<8x128xf32>
    %197 = arith.mulf %188, %167 : vector<8x128xf32>
    %198 = arith.addf %196, %197 : vector<8x128xf32>
    %199 = arith.select %34, %198, %168 : vector<8x128xi1>, vector<8x128xf32>
    %200 = vector.extract_strided_slice %10 {offsets = [40, 0], sizes = [8, 384], strides = [1, 1]} : vector<64x384xf32> to vector<8x384xf32>
    %cst_40 = arith.constant dense<0.000000e+00> : vector<8x384xf32>
    %201 = tpu.matmul %198, %41, %cst_40 {dimension_numbers = #tpu.dot_dimension_numbers<[1], [0], [0], [1], [0, 0, 1, 1], [], []>} : vector<8x128xf32>, vector<128x384xf32>, vector<8x384xf32> -> vector<8x384xf32>
    %202 = vector.broadcast %42 : vector<1x384xf32> to vector<8x384xf32>
    %203 = arith.addf %201, %202 : vector<8x384xf32>
    %204 = vector.extract_strided_slice %200 {offsets = [0, 0], sizes = [8, 128], strides = [1, 1]} : vector<8x384xf32> to vector<8x128xf32>
    %205 = vector.extract_strided_slice %203 {offsets = [0, 0], sizes = [8, 128], strides = [1, 1]} : vector<8x384xf32> to vector<8x128xf32>
    %206 = arith.addf %204, %205 : vector<8x128xf32>
    %207 = arith.negf %206 : vector<8x128xf32>
    %208 = math.exp %207 : vector<8x128xf32>
    %cst_41 = arith.constant 1.000000e+00 : f32
    %209 = vector.broadcast %cst_41 : f32 to vector<8x128xf32>
    %210 = arith.addf %209, %208 : vector<8x128xf32>
    %211 = arith.divf %209, %210 : vector<8x128xf32>
    %212 = vector.extract_strided_slice %200 {offsets = [0, 128], sizes = [8, 128], strides = [1, 1]} : vector<8x384xf32> to vector<8x128xf32>
    %213 = vector.extract_strided_slice %203 {offsets = [0, 128], sizes = [8, 128], strides = [1, 1]} : vector<8x384xf32> to vector<8x128xf32>
    %214 = arith.addf %212, %213 : vector<8x128xf32>
    %215 = arith.negf %214 : vector<8x128xf32>
    %216 = math.exp %215 : vector<8x128xf32>
    %cst_42 = arith.constant 1.000000e+00 : f32
    %217 = vector.broadcast %cst_42 : f32 to vector<8x128xf32>
    %218 = arith.addf %217, %216 : vector<8x128xf32>
    %219 = arith.divf %217, %218 : vector<8x128xf32>
    %220 = vector.extract_strided_slice %200 {offsets = [0, 256], sizes = [8, 128], strides = [1, 1]} : vector<8x384xf32> to vector<8x128xf32>
    %221 = vector.extract_strided_slice %203 {offsets = [0, 256], sizes = [8, 128], strides = [1, 1]} : vector<8x384xf32> to vector<8x128xf32>
    %222 = arith.mulf %211, %221 : vector<8x128xf32>
    %223 = arith.addf %220, %222 : vector<8x128xf32>
    %224 = math.tanh %223 : vector<8x128xf32>
    %cst_43 = arith.constant 1.000000e+00 : f32
    %225 = vector.broadcast %cst_43 : f32 to vector<8x128xf32>
    %226 = arith.subf %225, %219 : vector<8x128xf32>
    %227 = arith.mulf %226, %224 : vector<8x128xf32>
    %228 = arith.mulf %219, %198 : vector<8x128xf32>
    %229 = arith.addf %227, %228 : vector<8x128xf32>
    %230 = arith.select %36, %229, %199 : vector<8x128xi1>, vector<8x128xf32>
    %231 = vector.extract_strided_slice %10 {offsets = [48, 0], sizes = [8, 384], strides = [1, 1]} : vector<64x384xf32> to vector<8x384xf32>
    %cst_44 = arith.constant dense<0.000000e+00> : vector<8x384xf32>
    %232 = tpu.matmul %229, %41, %cst_44 {dimension_numbers = #tpu.dot_dimension_numbers<[1], [0], [0], [1], [0, 0, 1, 1], [], []>} : vector<8x128xf32>, vector<128x384xf32>, vector<8x384xf32> -> vector<8x384xf32>
    %233 = vector.broadcast %42 : vector<1x384xf32> to vector<8x384xf32>
    %234 = arith.addf %232, %233 : vector<8x384xf32>
    %235 = vector.extract_strided_slice %231 {offsets = [0, 0], sizes = [8, 128], strides = [1, 1]} : vector<8x384xf32> to vector<8x128xf32>
    %236 = vector.extract_strided_slice %234 {offsets = [0, 0], sizes = [8, 128], strides = [1, 1]} : vector<8x384xf32> to vector<8x128xf32>
    %237 = arith.addf %235, %236 : vector<8x128xf32>
    %238 = arith.negf %237 : vector<8x128xf32>
    %239 = math.exp %238 : vector<8x128xf32>
    %cst_45 = arith.constant 1.000000e+00 : f32
    %240 = vector.broadcast %cst_45 : f32 to vector<8x128xf32>
    %241 = arith.addf %240, %239 : vector<8x128xf32>
    %242 = arith.divf %240, %241 : vector<8x128xf32>
    %243 = vector.extract_strided_slice %231 {offsets = [0, 128], sizes = [8, 128], strides = [1, 1]} : vector<8x384xf32> to vector<8x128xf32>
    %244 = vector.extract_strided_slice %234 {offsets = [0, 128], sizes = [8, 128], strides = [1, 1]} : vector<8x384xf32> to vector<8x128xf32>
    %245 = arith.addf %243, %244 : vector<8x128xf32>
    %246 = arith.negf %245 : vector<8x128xf32>
    %247 = math.exp %246 : vector<8x128xf32>
    %cst_46 = arith.constant 1.000000e+00 : f32
    %248 = vector.broadcast %cst_46 : f32 to vector<8x128xf32>
    %249 = arith.addf %248, %247 : vector<8x128xf32>
    %250 = arith.divf %248, %249 : vector<8x128xf32>
    %251 = vector.extract_strided_slice %231 {offsets = [0, 256], sizes = [8, 128], strides = [1, 1]} : vector<8x384xf32> to vector<8x128xf32>
    %252 = vector.extract_strided_slice %234 {offsets = [0, 256], sizes = [8, 128], strides = [1, 1]} : vector<8x384xf32> to vector<8x128xf32>
    %253 = arith.mulf %242, %252 : vector<8x128xf32>
    %254 = arith.addf %251, %253 : vector<8x128xf32>
    %255 = math.tanh %254 : vector<8x128xf32>
    %cst_47 = arith.constant 1.000000e+00 : f32
    %256 = vector.broadcast %cst_47 : f32 to vector<8x128xf32>
    %257 = arith.subf %256, %250 : vector<8x128xf32>
    %258 = arith.mulf %257, %255 : vector<8x128xf32>
    %259 = arith.mulf %250, %229 : vector<8x128xf32>
    %260 = arith.addf %258, %259 : vector<8x128xf32>
    %261 = arith.select %38, %260, %230 : vector<8x128xi1>, vector<8x128xf32>
    %262 = vector.extract_strided_slice %10 {offsets = [56, 0], sizes = [8, 384], strides = [1, 1]} : vector<64x384xf32> to vector<8x384xf32>
    %cst_48 = arith.constant dense<0.000000e+00> : vector<8x384xf32>
    %263 = tpu.matmul %260, %41, %cst_48 {dimension_numbers = #tpu.dot_dimension_numbers<[1], [0], [0], [1], [0, 0, 1, 1], [], []>} : vector<8x128xf32>, vector<128x384xf32>, vector<8x384xf32> -> vector<8x384xf32>
    %264 = vector.broadcast %42 : vector<1x384xf32> to vector<8x384xf32>
    %265 = arith.addf %263, %264 : vector<8x384xf32>
    %266 = vector.extract_strided_slice %262 {offsets = [0, 0], sizes = [8, 128], strides = [1, 1]} : vector<8x384xf32> to vector<8x128xf32>
    %267 = vector.extract_strided_slice %265 {offsets = [0, 0], sizes = [8, 128], strides = [1, 1]} : vector<8x384xf32> to vector<8x128xf32>
    %268 = arith.addf %266, %267 : vector<8x128xf32>
    %269 = arith.negf %268 : vector<8x128xf32>
    %270 = math.exp %269 : vector<8x128xf32>
    %cst_49 = arith.constant 1.000000e+00 : f32
    %271 = vector.broadcast %cst_49 : f32 to vector<8x128xf32>
    %272 = arith.addf %271, %270 : vector<8x128xf32>
    %273 = arith.divf %271, %272 : vector<8x128xf32>
    %274 = vector.extract_strided_slice %262 {offsets = [0, 128], sizes = [8, 128], strides = [1, 1]} : vector<8x384xf32> to vector<8x128xf32>
    %275 = vector.extract_strided_slice %265 {offsets = [0, 128], sizes = [8, 128], strides = [1, 1]} : vector<8x384xf32> to vector<8x128xf32>
    %276 = arith.addf %274, %275 : vector<8x128xf32>
    %277 = arith.negf %276 : vector<8x128xf32>
    %278 = math.exp %277 : vector<8x128xf32>
    %cst_50 = arith.constant 1.000000e+00 : f32
    %279 = vector.broadcast %cst_50 : f32 to vector<8x128xf32>
    %280 = arith.addf %279, %278 : vector<8x128xf32>
    %281 = arith.divf %279, %280 : vector<8x128xf32>
    %282 = vector.extract_strided_slice %262 {offsets = [0, 256], sizes = [8, 128], strides = [1, 1]} : vector<8x384xf32> to vector<8x128xf32>
    %283 = vector.extract_strided_slice %265 {offsets = [0, 256], sizes = [8, 128], strides = [1, 1]} : vector<8x384xf32> to vector<8x128xf32>
    %284 = arith.mulf %273, %283 : vector<8x128xf32>
    %285 = arith.addf %282, %284 : vector<8x128xf32>
    %286 = math.tanh %285 : vector<8x128xf32>
    %cst_51 = arith.constant 1.000000e+00 : f32
    %287 = vector.broadcast %cst_51 : f32 to vector<8x128xf32>
    %288 = arith.subf %287, %281 : vector<8x128xf32>
    %289 = arith.mulf %288, %286 : vector<8x128xf32>
    %290 = arith.mulf %281, %260 : vector<8x128xf32>
    %291 = arith.addf %289, %290 : vector<8x128xf32>
    %292 = arith.select %40, %291, %261 : vector<8x128xi1>, vector<8x128xf32>
    %c0_52 = arith.constant 0 : index
    %c0_53 = arith.constant 0 : index
    %293 = vector.load %arg1[%c0_52, %c0_53] : memref<2x32xf32, #tpu.memory_space<vmem>>, vector<2x32xf32>
    %c0_54 = arith.constant 0 : index
    %c0_55 = arith.constant 0 : index
    %294 = vector.load %arg6[%c0_54, %c0_55] : memref<32x32xf32, #tpu.memory_space<vmem>>, vector<32x32xf32>
    %cst_56 = arith.constant dense<0.000000e+00> : vector<2x32xf32>
    %295 = tpu.matmul %293, %294, %cst_56 {dimension_numbers = #tpu.dot_dimension_numbers<[1], [0], [0], [1], [0, 0, 1, 1], [], []>} : vector<2x32xf32>, vector<32x32xf32>, vector<2x32xf32> -> vector<2x32xf32>
    %c0_57 = arith.constant 0 : index
    %c0_58 = arith.constant 0 : index
    %296 = vector.load %arg7[%c0_57, %c0_58] : memref<1x32xf32, #tpu.memory_space<vmem>>, vector<1x32xf32>
    %297 = vector.broadcast %296 : vector<1x32xf32> to vector<2x32xf32>
    %298 = arith.addf %295, %297 : vector<2x32xf32>
    %299 = math.tanh %298 : vector<2x32xf32>
    %c0_59 = arith.constant 0 : index
    %c0_60 = arith.constant 0 : index
    %300 = vector.load %arg8[%c0_59, %c0_60] : memref<128x32xf32, #tpu.memory_space<vmem>>, vector<128x32xf32>
    %cst_61 = arith.constant dense<0.000000e+00> : vector<8x32xf32>
    %301 = tpu.matmul %292, %300, %cst_61 {dimension_numbers = #tpu.dot_dimension_numbers<[1], [0], [0], [1], [0, 0, 1, 1], [], []>} : vector<8x128xf32>, vector<128x32xf32>, vector<8x32xf32> -> vector<8x32xf32>
    %c0_62 = arith.constant 0 : index
    %c0_63 = arith.constant 0 : index
    %302 = vector.load %arg9[%c0_62, %c0_63] : memref<1x32xf32, #tpu.memory_space<vmem>>, vector<1x32xf32>
    %303 = vector.broadcast %302 : vector<1x32xf32> to vector<8x32xf32>
    %304 = arith.addf %301, %303 : vector<8x32xf32>
    %305 = math.tanh %304 : vector<8x32xf32>
    %306 = vector.extract_strided_slice %305 {offsets = [0, 0], sizes = [2, 32], strides = [1, 1]} : vector<8x32xf32> to vector<2x32xf32>
    %307 = arith.mulf %306, %299 : vector<2x32xf32>
    %308 = math.tanh %307 : vector<2x32xf32>
    %c0_64 = arith.constant 0 : index
    %c0_65 = arith.constant 0 : index
    %309 = vector.load %arg10[%c0_64, %c0_65] : memref<32x16xf32, #tpu.memory_space<vmem>>, vector<32x16xf32>
    %cst_66 = arith.constant dense<0.000000e+00> : vector<2x16xf32>
    %310 = tpu.matmul %308, %309, %cst_66 {dimension_numbers = #tpu.dot_dimension_numbers<[1], [0], [0], [1], [0, 0, 1, 1], [], []>} : vector<2x32xf32>, vector<32x16xf32>, vector<2x16xf32> -> vector<2x16xf32>
    %c0_67 = arith.constant 0 : index
    %c0_68 = arith.constant 0 : index
    %311 = vector.load %arg11[%c0_67, %c0_68] : memref<1x16xf32, #tpu.memory_space<vmem>>, vector<1x16xf32>
    %312 = vector.broadcast %311 : vector<1x16xf32> to vector<2x16xf32>
    %313 = arith.addf %310, %312 : vector<2x16xf32>
    %c0_69 = arith.constant 0 : index
    %c0_70 = arith.constant 0 : index
    %314 = vector.load %arg12[%c0_69, %c0_70] : memref<2x16xf32, #tpu.memory_space<vmem>>, vector<2x16xf32>
    tpu.vector_store %arg12[%c0_69, %c0_70], %313 {strides = array<i32>} : memref<2x16xf32, #tpu.memory_space<vmem>>, vector<2x16xf32>,
    return
  }
}

</mosaic_0001>

<bundles_post_ra>
// kernel: mlb_noatt_forward.1
= control target key start
LH: loop header
LB: loop body
LE: loop exit
PB: predicated region body
PF: predicated region fallthrough
CT: control target
= control target key end

     0   :  { %17 = vsyncpa [#allocation3], 0  ;;  %s4327_s0 = inlined_call_operand.vmem [shape: s32[64,1], index: 0, kind: input, shape index: {}]   ;;  %s4328_s1 = inlined_call_operand.vmem [shape: f32[2,32], index: 1, kind: input, shape index: {}]   ;;  %s4329_s2 = inlined_call_operand.hbm [shape: f32[128,384], index: 2, kind: input, shape index: {}]   ;;  %s4330_s3 = inlined_call_operand.vmem [shape: f32[1,384], index: 3, kind: input, shape index: {}]   ;;  %s4331_s4 = inlined_call_operand.hbm [shape: f32[128,384], index: 4, kind: input, shape index: {}]   ;;  %s4332_s5 = inlined_call_operand.vmem [shape: f32[1,384], index: 5, kind: input, shape index: {}]   ;;  %s4333_s6 = inlined_call_operand.vmem [shape: f32[32,32], index: 6, kind: input, shape index: {}]   ;;  %s4334_s7 = inlined_call_operand.vmem [shape: f32[1,32], index: 7, kind: input, shape index: {}]   ;;  %s4335_s8 = inlined_call_operand.vmem [shape: f32[128,32], index: 8, kind: input, shape index: {}]   ;;  %s4336_s9 = inlined_call_operand.vmem [shape: f32[1,32], index: 9, kind: input, shape index: {}]   ;;  %s4337_s10 = inlined_call_operand.vmem [shape: f32[32,16], index: 10, kind: input, shape index: {}]   ;;  %s4338_s11 = inlined_call_operand.vmem [shape: f32[1,16], index: 11, kind: input, shape index: {}]   ;;  %s4339_s12 = inlined_call_operand.hbm [shape: f32[2,16], index: 12, kind: output, shape index: {}]  }
   0x1   :  { %18 = vsyncpa [#allocation6], 0 }
   0x2   :  { %19 = vsyncpa [#allocation4], 0  ;;  %s3089_s21 = smov [#allocation2]  }
   0x3   :  { %s29_s22 = sshll.u32 %s3089_s21, 4  ;;  %s30_s22 = int_to_ptr.vmem [resolvable:$true] %s29_s22 }
   0x4   :  { %s3031_s23 = scalar_lea.vmem %s30_s22, 6144  ;;  %p3036_p1 = scmp.lt.s32.totalorder %s30_s22, %s30_s22 }
   0x5   :  { %p3032_p0 = scmp.ne.s32.totalorder %s30_s22, %s3031_s23  ;;  %p3037_p2 = scmp.lt.s32.totalorder %s3031_s23, %s3031_s23 }
   0x7   :  { %p3038_p3 = por %p3037_p2, %p3036_p1 }
   0x9   :  { %p3039_p4 = pnand %p3038_p3, %p3032_p0 }
   0xb   :  { %3042 = shalt.err (!%p3039_p4)
}
   0xc   :  { %s3090_s24 = smov 384   ;;  %s3091_s25 = smov 24  }
   0xd   :  { %35 = dma.hbm_to_vmem [thread:$0]  %s4329_s2, 6144, %s30_s22, [#allocation3], %s3090_s24, %s3090_s24, %s3091_s25  }
   0xe   :  { %s3092_s28 = smov [#allocation5]  }
   0xf   :  { %s43_s29 = sshll.u32 %s3092_s28, 4  ;;  %s44_s29 = int_to_ptr.vmem [resolvable:$true] %s43_s29 }
  0x10   :  { %s3051_s30 = scalar_lea.vmem %s44_s29, 6144  ;;  %p3056_p6 = scmp.lt.s32.totalorder %s44_s29, %s44_s29 }
  0x11   :  { %p3052_p5 = scmp.ne.s32.totalorder %s44_s29, %s3051_s30  ;;  %p3057_p7 = scmp.lt.s32.totalorder %s3051_s30, %s3051_s30 }
  0x13   :  { %p3058_p8 = por %p3057_p7, %p3056_p6 }
  0x15   :  { %p3059_p9 = pnand %p3058_p8, %p3052_p5 }
  0x17   :  { %3062 = shalt.err (!%p3059_p9)
}
  0x18   :  { %49 = dma.hbm_to_vmem [thread:$0]  %s4331_s4, 6144, %s44_s29, [#allocation6], %s3090_s24, %s3090_s24, %s3091_s25  }
  0x19   :  { %3083 = dma.done.wait [#allocation3], 6144  }
  0x1a   :  { %3084 = vsyncadd [#allocation3], 4294961152 }
  0x1b   :  { %3085 = dma.done.wait [#allocation6], 6144  }
  0x1c   :  { %3086 = vsyncadd [#allocation6], 4294961152  ;;  %v3093_v0 = vmov 0   ;;  %v4340_v1 = vmov 0.0   ;;  %v3173_v2 = vld [vmem:[%s4327_s0 + $0x10] sm:$0xff]  ;;  %v3178_v3 = vld [vmem:[%s4327_s0] sm:$0xff] }
  0x1d   :  { %2878 = vset.pattern.permute.xlu1 %v3093_v0  ;;  %2877 = vset.pattern.permute.xlu0 %v3093_v0  ;;  %v3185_v4 = vld [vmem:[%s4327_s0 + $0x18] sm:$0xff]  ;;  %v3190_v5 = vld [vmem:[%s4327_s0 + $0x8] sm:$0xff]  ;;  %v76_v6 = vld [vmem:[%s4327_s0 + $0x30] sm:$0xff]  ;;  %vm419_vm4 = vcmp.ne.s32.totalorder %v3173_v2, 0  ;;  %vm417_vm6 = vcmp.ne.s32.totalorder %v3178_v3, 0 }
  0x1e   :  { %257 = vmatprep.mubr.f32.mxu0 %v4340_v1  ;;  %87 = vperm.xlu1 %2878, %v3173_v2   ;;  %v77_v7 = vld [vmem:[%s4327_s0 + $0x38] sm:$0xff]  ;;  %vm423_vm0 = vcmp.ne.s32.totalorder %v76_v6, 0  ;;  %v174_v8 = vld [vmem:[#allocation2 + $0x170] sm:$0xff]  ;;  %v173_v9 = vld [vmem:[#allocation2 + $0x168] sm:$0xff]  ;;  %vm420_vm5 = vcmp.ne.s32.totalorder %v3185_v4, 0  ;;  %v2244_v35 = vsel %vm419_vm4, 1.0, %v4340_v1 }
  0x1f   :  { %81 = vperm.xlu0 %2877, %v3178_v3   ;;  %vm424_vm1 = vcmp.ne.s32.totalorder %v77_v7, 0  ;;  %193 = vmatprep.subr.mxu0 %v174_v8  ;;  %v171_v10 = vld [vmem:[#allocation2 + $0x158] sm:$0xff]  ;;  %v170_v11 = vld [vmem:[#allocation2 + $0x150] sm:$0xff]  ;;  %v75_v13 = vld [vmem:[%s4327_s0 + $0x28] sm:$0xff]  ;;  %v2248_v15 = vsel %vm423_vm0, 1.0, %v4340_v1  ;;  %v2245_v36 = vsel %vm420_vm5, 1.0, %v4340_v1 }
  0x20   :  { %v175_v12 = vld [vmem:[#allocation2 + $0x178] sm:$0xff]  ;;  %v74_v14 = vld [vmem:[%s4327_s0 + $0x20] sm:$0xff]  ;;  %v2249_v16 = vsel %vm424_vm1, 1.0, %v4340_v1  ;;  %194 = vmatpush1.msra.mxu0 %v173_v9  ;;  %vm422_vm2 = vcmp.ne.s32.totalorder %v75_v13, 0  ;;  %v169_v20 = vld [vmem:[#allocation2 + $0x148] sm:$0xff]  ;;  %vm418_vm7 = vcmp.ne.s32.totalorder %v3190_v5, 0 }
  0x21   :  { %2468 = vmatprep.subr.mxu1 %v175_v12  ;;  %v172_v17 = vld [vmem:[#allocation2 + $0x160] sm:$0xff]  ;;  %vm421_vm3 = vcmp.ne.s32.totalorder %v74_v14, 0  ;;  %195 = vmatprep.subr.mxu0 %v171_v10  ;;  %v167_v19 = vld [vmem:[#allocation2 + $0x138] sm:$0xff]  ;;  %v2879_v21 = vpack.i.bf16 %v2248_v15, %v2249_v16  ;;  %v165_v22 = vld [vmem:[#allocation2 + $0x128] sm:$0xff]  ;;  %v2247_v23 = vsel %vm422_vm2, 1.0, %v4340_v1  ;;  %v2243_v42 = vsel %vm418_vm7, 1.0, %v4340_v1 }
  0x22   :  { %90 = vperm.xlu1 %2878, %v3185_v4   ;;  %v168_v18 = vld [vmem:[#allocation2 + $0x140] sm:$0xff]  ;;  %2469 = vmatpush3.msra.mxu1 %v175_v12  ;;  %v2246_v24 = vsel %vm421_vm3, 1.0, %v4340_v1  ;;  %v166_v26 = vld [vmem:[#allocation2 + $0x130] sm:$0xff]  ;;  %v161_v29 = vld [vmem:[#allocation2 + $0x108] sm:$0xff]  ;;  %v2242_v43 = vsel %vm417_vm6, 1.0, %v4340_v1  ;;  %v3095_v12 = vmov 1.0  }
  0x23   :  { %84 = vperm.xlu0 %2877, %v3190_v5   ;;  %196 = vmatpush1.msra.mxu0 %v170_v11  ;;  %v164_v25 = vld [vmem:[#allocation2 + $0x120] sm:$0xff]  ;;  %v162_v27 = vld [vmem:[#allocation2 + $0x110] sm:$0xff]  ;;  %v2884_v28 = vpack.i.bf16 %v2246_v24, %v2247_v23  ;;  %v163_v30 = vld [vmem:[#allocation2 + $0x118] sm:$0xff]  ;;  %vm481_vm1 = vcmask 523264   ;;  %vm3096_vm2 = vmmov 0   ;;  %vm1944_vm3 = vcmask 261120  }
  0x24   :  { %2470 = vmatprep.subr.mxu1 %v172_v17  ;;  %197 = vmatprep.subr.mxu0 %v168_v18  ;;  %v159_v31 = vld [vmem:[#allocation2 + $0xf8] sm:$0xff]  ;;  %v158_v32 = vld [vmem:[#allocation2 + $0xf0] sm:$0xff]  ;;  %v160_v33 = vld [vmem:[#allocation2 + $0x100] sm:$0xff] }
  0x25   :  { %2471 = vmatpush3.msra.mxu1 %v172_v17  ;;  %198 = vmatpush1.msra.mxu0 %v167_v19  ;;  %v156_v34 = vld [vmem:[#allocation2 + $0xe0] sm:$0xff]  ;;  %v155_v37 = vld [vmem:[#allocation2 + $0xd8] sm:$0xff]  ;;  %v157_v38 = vld [vmem:[#allocation2 + $0xe8] sm:$0xff] }
  0x26   :  { %96 = vperm.xlu1 %2878, %v75_v13   ;;  %2472 = vmatprep.subr.mxu1 %v169_v20  ;;  %v153_v39 = vld [vmem:[#allocation2 + $0xc8] sm:$0xff]  ;;  %v152_v40 = vld [vmem:[#allocation2 + $0xc0] sm:$0xff]  ;;  %v154_v41 = vld [vmem:[#allocation2 + $0xd0] sm:$0xff] }
  0x27   :  { %93 = vperm.xlu0 %2877, %v74_v14   ;;  %199 = vmatprep.subr.mxu0 %v165_v22  ;;  %v150_v44 = vld [vmem:[#allocation2 + $0xb0] sm:$0xff]  ;;  %v149_v45 = vld [vmem:[#allocation2 + $0xa8] sm:$0xff]  ;;  %v151_v46 = vld [vmem:[#allocation2 + $0xb8] sm:$0xff] }
  0x28   :  { %2473 = vmatpush3.msra.mxu1 %v169_v20  ;;  %200 = vmatpush1.msra.mxu0 %v164_v25  ;;  %v147_v47 = vld [vmem:[#allocation2 + $0x98] sm:$0xff]  ;;  %v146_v48 = vld [vmem:[#allocation2 + $0x90] sm:$0xff]  ;;  %v148_v49 = vld [vmem:[#allocation2 + $0xa0] sm:$0xff] }
  0x29   :  { %2474 = vmatprep.subr.mxu1 %v166_v26  ;;  %201 = vmatprep.subr.mxu0 %v162_v27  ;;  %v144_v50 = vld [vmem:[#allocation2 + $0x80] sm:$0xff]  ;;  %v143_v51 = vld [vmem:[#allocation2 + $0x78] sm:$0xff]  ;;  %v145_v52 = vld [vmem:[#allocation2 + $0x88] sm:$0xff] }
  0x2a   :  { %99 = vperm.xlu1 %2878, %v76_v6   ;;  %2475 = vmatpush3.msra.mxu1 %v166_v26  ;;  %v141_v53 = vld [vmem:[#allocation2 + $0x68] sm:$0xff]  ;;  %v140_v54 = vld [vmem:[#allocation2 + $0x60] sm:$0xff]  ;;  %v142_v55 = vld [vmem:[#allocation2 + $0x70] sm:$0xff]  ;;  %v78_v6 = vlaneseq }
  0x2b   :  { %2880 = vperm.xlu0 %2877, %v2879_v21   ;;  %202 = vmatpush1.msra.mxu0 %v161_v29  ;;  %v138_v56 = vld [vmem:[#allocation2 + $0x50] sm:$0xff]  ;;  %v137_v57 = vld [vmem:[#allocation2 + $0x48] sm:$0xff]  ;;  %v139_v58 = vld [vmem:[#allocation2 + $0x58] sm:$0xff] }
  0x2c   :  { %2476 = vmatprep.subr.mxu1 %v163_v30  ;;  %203 = vmatprep.subr.mxu0 %v159_v31  ;;  %v135_v59 = vld [vmem:[#allocation2 + $0x38] sm:$0xff]  ;;  %v134_v60 = vld [vmem:[#allocation2 + $0x30] sm:$0xff]  ;;  %v136_v61 = vld [vmem:[#allocation2 + $0x40] sm:$0xff] }
  0x2d   :  { %2477 = vmatpush3.msra.mxu1 %v163_v30  ;;  %204 = vmatpush1.msra.mxu0 %v158_v32  ;;  %v132_v62 = vld [vmem:[#allocation2 + $0x20] sm:$0xff]  ;;  %v131_v63 = vld [vmem:[#allocation2 + $0x18] sm:$0xff]  ;;  %v133_v0 = vld [vmem:[#allocation2 + $0x28] sm:$0xff] }
  0x2e   :  { %102 = vperm.xlu1 %2878, %v77_v7   ;;  %2478 = vmatprep.subr.mxu1 %v160_v33  ;;  %v129_v2 = vld [vmem:[#allocation2 + $0x8] sm:$0xff]  ;;  %v128_v3 = vld [vmem:[#allocation2] sm:$0xff]  ;;  %v130_v4 = vld [vmem:[#allocation2 + $0x10] sm:$0xff]  ;;  %v3223_v7 = vand.u32 127, %v78_v6 }
  0x2f   :  { %2885 = vperm.xlu0 %2877, %v2884_v28   ;;  %205 = vmatprep.subr.mxu0 %v156_v34  ;;  %v3218_v5 = vld [vmem:[#allocation5 + $0x170] sm:$0xff]  ;;  %v3225_v10 = vld [vmem:[#allocation5 + $0x168] sm:$0xff]  ;;  %v3228_v11 = vld [vmem:[#allocation5 + $0x158] sm:$0xff] }
  0x30   :  { %2479 = vmatpush3.msra.mxu1 %v160_v33  ;;  %206 = vmatpush1.msra.mxu0 %v155_v37  ;;  %4373 = vst [vmem:[#allocation11_spill] sm:$0xff] %v3218_v5  ;;  %v3232_v13 = vld [vmem:[#allocation5 + $0x150] sm:$0xff]  ;;  %v3236_v14 = vld [vmem:[#allocation5 + $0x140] sm:$0xff]  ;;  %v3239_v17 = vld [vmem:[#allocation5 + $0x138] sm:$0xff] }
  0x31   :  { %2480 = vmatprep.subr.mxu1 %v157_v38  ;;  %207 = vmatprep.subr.mxu0 %v153_v39  ;;  %v3243_v18 = vld [vmem:[#allocation5 + $0x128] sm:$0xff]  ;;  %v3248_v19 = vld [vmem:[#allocation5 + $0x120] sm:$0xff]  ;;  %v3252_v20 = vld [vmem:[#allocation5 + $0x110] sm:$0xff] }
  0x32   :  { %453 = vperm.xlu1 %2878, %v2244_v35   ;;  %2481 = vmatpush3.msra.mxu1 %v157_v38  ;;  %v3259_v23 = vld [vmem:[#allocation5 + $0x108] sm:$0xff]  ;;  %v3266_v24 = vld [vmem:[#allocation5 + $0xf8] sm:$0xff]  ;;  %v3272_v25 = vld [vmem:[#allocation5 + $0xf0] sm:$0xff] }
  0x33   :  { %458 = vperm.xlu0 %2877, %v2245_v36   ;;  %208 = vmatpush1.msra.mxu0 %v152_v40  ;;  %v3278_v26 = vld [vmem:[#allocation5 + $0xe0] sm:$0xff]  ;;  %v3286_v29 = vld [vmem:[#allocation5 + $0xd8] sm:$0xff]  ;;  %v3298_v31 = vld [vmem:[#allocation5 + $0xc8] sm:$0xff] }
  0x34   :  { %2482 = vmatprep.subr.mxu1 %v154_v41  ;;  %209 = vmatprep.subr.mxu0 %v150_v44  ;;  %v3305_v32 = vld [vmem:[#allocation5 + $0xc0] sm:$0xff]  ;;  %v3313_v35 = vld [vmem:[#allocation5 + $0xb0] sm:$0xff]  ;;  %v3321_v38 = vld [vmem:[#allocation5 + $0xa8] sm:$0xff] }
  0x35   :  { %2483 = vmatpush3.msra.mxu1 %v154_v41  ;;  %210 = vmatpush1.msra.mxu0 %v149_v45  ;;  %v3324_v39 = vld [vmem:[#allocation5 + $0x98] sm:$0xff]  ;;  %v3333_v40 = vld [vmem:[#allocation5 + $0x90] sm:$0xff]  ;;  %v3345_v44 = vld [vmem:[#allocation5 + $0x68] sm:$0xff] }
  0x36   :  { %443 = vperm.xlu1 %2878, %v2242_v43   ;;  %2484 = vmatprep.subr.mxu1 %v151_v46  ;;  %v3342_v43 = vld [vmem:[#allocation5 + $0x78] sm:$0xff] }
  0x37   :  { %448 = vperm.xlu0 %2877, %v2243_v42   ;;  %211 = vmatprep.subr.mxu0 %v147_v47  ;;  %v3338_v42 = vld [vmem:[#allocation5 + $0x80] sm:$0xff] }
  0x38   :  { %2485 = vmatpush3.msra.mxu1 %v151_v46  ;;  %212 = vmatpush1.msra.mxu0 %v146_v48  ;;  %v3352_v46 = vld [vmem:[#allocation5 + $0x60] sm:$0xff]  ;;  %v3357_v48 = vld [vmem:[#allocation5 + $0x50] sm:$0xff] }
  0x39   :  { %2486 = vmatprep.subr.mxu1 %v148_v49  ;;  %213 = vmatprep.subr.mxu0 %v144_v50  ;;  %v3364_v50 = vld [vmem:[#allocation5 + $0x38] sm:$0xff] }
  0x3a   :  { %2487 = vmatpush3.msra.mxu1 %v148_v49  ;;  %214 = vmatpush1.msra.mxu0 %v143_v51  ;;  %v3361_v49 = vld [vmem:[#allocation5 + $0x48] sm:$0xff]  ;;  %v3367_v51 = vshrl.u32 %v78_v6, 7  ;;  %v3444_v6 = vld [vmem:[#allocation5 + $0xd0] sm:$0xff] }
  0x3b   :  { %2488 = vmatprep.subr.mxu1 %v145_v52  ;;  %215 = vmatprep.subr.mxu0 %v141_v53  ;;  %v3375_v53 = vld [vmem:[#allocation5 + $0x30] sm:$0xff] }
  0x3c   :  { %2489 = vmatpush3.msra.mxu1 %v145_v52  ;;  %216 = vmatpush1.msra.mxu0 %v140_v54  ;;  %v413_v52 = vand.u32 7, %v3223_v7  ;;  %4374 = vst [vmem:[#allocation12_spill] sm:$0xff] %v3375_v53 }
  0x3d   :  { %2490 = vmatprep.subr.mxu1 %v142_v55  ;;  %217 = vmatprep.subr.mxu0 %v138_v56 }
  0x3e   :  { %2491 = vmatpush3.msra.mxu1 %v142_v55  ;;  %218 = vmatpush1.msra.mxu0 %v137_v57  ;;  %v3380_v55 = vld [vmem:[#allocation5 + $0x20] sm:$0xff]  ;;  %v3384_v57 = vld [vmem:[#allocation5 + $0x18] sm:$0xff]  ;;  %vm414_vm0 = vcmp.eq.s32.totalorder %v413_v52, %v3367_v51 }
  0x3f   :  { %2492 = vmatprep.subr.mxu1 %v139_v58  ;;  %219 = vmatprep.subr.mxu0 %v135_v59  ;;  %4375 = vst [vmem:[#allocation13_spill] sm:$0xff] %v3380_v55  ;;  %4376 = vst [vmem:[#allocation14_spill] sm:$0xff] %v3384_v57  ;;  %v3395_v59 = vld [vmem:[#allocation5] sm:$0xff] }
  0x40   :  { %2493 = vmatpush3.msra.mxu1 %v139_v58  ;;  %220 = vmatpush1.msra.mxu0 %v134_v60  ;;  %v3388_v58 = vld [vmem:[#allocation5 + $0x8] sm:$0xff]  ;;  %4378 = vst [vmem:[#allocation16_spill] sm:$0xff] %v3395_v59  ;;  %v2241_v60 = vsel %vm414_vm0, 1.0, %v4340_v1 }
  0x41   :  { %2494 = vmatprep.subr.mxu1 %v136_v61  ;;  %221 = vmatprep.subr.mxu0 %v132_v62  ;;  %4377 = vst [vmem:[#allocation15_spill] sm:$0xff] %v3388_v58  ;;  %v3408_v62 = vld [vmem:[#allocation5 + $0x160] sm:$0xff] }
  0x42   :  { %2495 = vmatpush3.msra.mxu1 %v136_v61  ;;  %222 = vmatpush1.msra.mxu0 %v131_v63  ;;  %v3403_v61 = vld [vmem:[#allocation5 + $0x178] sm:$0xff]  ;;  %v3414_v63 = vld [vmem:[#allocation5 + $0x148] sm:$0xff] }
  0x43   :  { %2496 = vmatprep.subr.mxu1 %v133_v0  ;;  %223 = vmatprep.subr.mxu0 %v129_v2  ;;  %v3426_v2 = vld [vmem:[#allocation5 + $0x118] sm:$0xff] }
  0x44   :  { %2497 = vmatpush3.msra.mxu1 %v133_v0  ;;  %224 = vmatpush1.msra.mxu0 %v128_v3  ;;  %v3420_v0 = vld [vmem:[#allocation5 + $0x130] sm:$0xff]  ;;  %v3432_v3 = vld [vmem:[#allocation5 + $0x100] sm:$0xff] }
  0x45   :  { %2498 = vmatprep.subr.mxu1 %v130_v4  ;;  %628 = vmatprep.subr.mxu0 %v3218_v5 }
  0x46   :  { %2499 = vmatpush3.msra.mxu1 %v130_v4  ;;  %v3438_v4 = vld [vmem:[#allocation5 + $0xe8] sm:$0xff] }
  0x47   :  { %2512 = vmatprep.subr.mxu1 %v4340_v1 }
  0x99   :  { %v88_v8 = vpop.permute.xlu1 %87 }
  0x9a   :  { %v82_v9 = vpop.permute.xlu0 %81  ;;  %vm106_vm10 = vcmp.eq.s32.totalorder %v88_v8, %v3223_v7  ;;  %v3456_v8 = vld [vmem:[#allocation5 + $0xa0] sm:$0xff] }
  0x9b   :  { %vm104_vm8 = vcmp.eq.s32.totalorder %v82_v9, %v3223_v7  ;;  %v3462_v9 = vld [vmem:[#allocation5 + $0x88] sm:$0xff] }
  0x9c   :  { %2225 = vmatmul.mubr.msk.f32.vlgmr.msra.gmra.mxu0 %vm104_vm8, %v3095_v12  ;;  %2500 = vmatprep.mubr.msk.f32.mxu1 %vm104_vm8, %v3095_v12 }
  0x9d   :  { %629 = vmatpush1.msra.mxu0 %v3225_v10  ;;  %263 = vmatprep.mubr.f32.mxu0 %v4340_v1  ;;  %v91_v15 = vpop.permute.xlu1 %90 }
  0x9e   :  { %630 = vmatprep.subr.mxu0 %v3228_v11  ;;  %v85_v16 = vpop.permute.xlu0 %84  ;;  %vm107_vm11 = vcmp.eq.s32.totalorder %v91_v15, %v3223_v7  ;;  %v3474_v15 = vld [vmem:[#allocation5 + $0x58] sm:$0xff] }
  0x9f   :  { %631 = vmatpush1.msra.mxu0 %v3232_v13  ;;  %vm105_vm9 = vcmp.eq.s32.totalorder %v85_v16, %v3223_v7  ;;  %v3480_v16 = vld [vmem:[#allocation5 + $0x40] sm:$0xff] }
  0xa0   :  { %632 = vmatprep.subr.mxu0 %v3236_v14  ;;  %2226 = vmatmul.mubr.msk.f32.gmra.mxu0 %vm105_vm9, %v3095_v12  ;;  %4379 = vst [vmem:[#allocation17_spill] sm:$0xff] %v3480_v16 }
  0xa1   :  { %2501 = vmatmul.mubr.msk.f32.vlgmr.msra.gmra.mxu1 %vm105_vm9, %v3095_v12  ;;  %633 = vmatpush1.msra.mxu0 %v3239_v17  ;;  %v3256_v21 = vpop.permute.xlu1 %96 }
  0xa2   :  { %634 = vmatprep.subr.mxu0 %v3243_v18  ;;  %v94_v22 = vpop.permute.xlu0 %93  ;;  %269 = vmatprep.mubr.f32.mxu0 %v4340_v1  ;;  %vm109_vm14 = vcmp.eq.s32.totalorder %v3256_v21, %v3223_v7  ;;  %v3486_v21 = vld [vmem:[#allocation5 + $0x28] sm:$0xff] }
  0xa3   :  { %635 = vmatpush1.msra.mxu0 %v3248_v19  ;;  %vm108_vm12 = vcmp.eq.s32.totalorder %v94_v22, %v3223_v7  ;;  %2503 = vmatprep.mubr.msk.f32.mxu1 %vm106_vm10, %v3095_v12  ;;  %4380 = vst [vmem:[#allocation18_spill] sm:$0xff] %v3486_v21  ;;  %v3492_v22 = vld [vmem:[#allocation5 + $0x10] sm:$0xff] }
  0xa4   :  { %636 = vmatprep.subr.mxu0 %v3252_v20  ;;  %2227 = vmatmul.mubr.msk.f32.gmra.mxu0 %vm106_vm10, %v3095_v12  ;;  %4381 = vst [vmem:[#allocation19_spill] sm:$0xff] %v3492_v22 }
  0xa5   :  { %2504 = vmatmul.mubr.msk.f32.gmra.mxu1 %vm107_vm11, %v3095_v12  ;;  %637 = vmatpush1.msra.mxu0 %v3259_v23  ;;  %v3284_v27 = vpop.permute.xlu1 %99 }
  0xa6   :  { %2506 = vmatprep.mubr.msk.f32.mxu1 %vm108_vm12, %v3095_v12  ;;  %638 = vmatprep.subr.mxu0 %v3266_v24  ;;  %v2881_v28 = vpop.permute.xlu0 %2880  ;;  %vm110_vm13 = vcmp.eq.s32.totalorder %v3284_v27, %v3223_v7  ;;  %v4347_v27 = vsub.s32 2, %v3367_v51 }
  0xa7   :  { %639 = vmatpush1.msra.mxu0 %v3272_v25  ;;  %v2882_v30 = vunpack.i.l.bf16 %v2881_v28  ;;  %275 = vmatprep.mubr.f32.mxu0 %v4340_v1  ;;  %v2883_v36 = vunpack.i.h.bf16 %v2881_v28  ;;  %v180_v28 = vsub.s32 0, %v3367_v51 }
  0xa8   :  { %640 = vmatprep.subr.mxu0 %v3278_v26  ;;  %2228 = vmatmul.mubr.msk.f32.gmra.mxu0 %vm107_vm11, %v3095_v12 }
  0xa9   :  { %2507 = vmatmul.mubr.msk.f32.gmra.mxu1 %vm109_vm14, %v3095_v12  ;;  %641 = vmatpush1.msra.mxu0 %v3286_v29  ;;  %v3311_v33 = vpop.permute.xlu1 %102 }
  0xaa   :  { %2509 = vmatprep.mubr.msk.f32.mxu1 %vm110_vm13, %v3095_v12  ;;  %2513 = vmatpush3.msra.mxu1 %v2882_v30  ;;  %v2886_v34 = vpop.permute.xlu0 %2885  ;;  %vm111_vm15 = vcmp.eq.s32.totalorder %v3311_v33, %v3223_v7  ;;  %v3450_v7 = vld [vmem:[#allocation5 + $0xb8] sm:$0xff]  ;;  %v176_v30 = vld [vmem:[%s4330_s3] sm:$0x7] }
  0xab   :  { %642 = vmatprep.subr.mxu0 %v3298_v31  ;;  %2514 = vmatprep.subr.mxu1 %v4340_v1  ;;  %v2887_v37 = vunpack.i.l.bf16 %v2886_v34  ;;  %v2888_v41 = vunpack.i.h.bf16 %v2886_v34  ;;  %v184_v34 = vsub.s32 1, %v3367_v51 }
  0xac   :  { %643 = vmatpush1.msra.mxu0 %v3305_v32  ;;  %281 = vmatprep.mubr.f32.mxu0 %v4340_v1 }
  0xad   :  { %2515 = vmatpush3.msra.mxu1 %v2883_v36  ;;  %644 = vmatprep.subr.mxu0 %v3313_v35  ;;  %v454_v47 = vpop.permute.xlu1 %453  ;;  %v3549_v36 = vrot.slane %v176_v30, %v4347_v27 }
  0xae   :  { %2229 = vmatmul.mubr.msk.f32.gmra.mxu0 %vm108_vm12, %v3095_v12  ;;  %2510 = vmatmul.mubr.msk.f32.gmra.mxu1 %vm111_vm15, %v3095_v12  ;;  %v459_v45 = vpop.permute.xlu0 %458  ;;  %vm2199_vm12 = vcmask 123904  }
  0xaf   :  { %2516 = vmatprep.subr.mxu1 %v4340_v1  ;;  %645 = vmatpush1.msra.mxu0 %v3321_v38 }
  0xb0   :  { %2517 = vmatpush3.msra.mxu1 %v2887_v37  ;;  %646 = vmatprep.subr.mxu0 %v3324_v39 }
  0xb1   :  { %647 = vmatpush1.msra.mxu0 %v3333_v40  ;;  %2518 = vmatprep.subr.mxu1 %v4340_v1  ;;  %v444_v56 = vpop.permute.xlu1 %443 }
  0xb2   :  { %287 = vmatprep.mubr.f32.mxu0 %v4340_v1  ;;  %2519 = vmatpush3.msra.mxu1 %v2888_v41  ;;  %v449_v54 = vpop.permute.xlu0 %448  ;;  %v181_v41 = vrot.slane %v176_v30, %v180_v28 }
  0xb3   :  { %648 = vmatprep.subr.mxu0 %v3338_v42  ;;  %2230 = vmatmul.mubr.msk.f32.gmra.mxu0 %vm109_vm14, %v3095_v12 }
  0xb4   :  { %2520 = vmatprep.subr.mxu1 %v4340_v1  ;;  %649 = vmatpush1.msra.mxu0 %v3342_v43 }
  0xb5   :  { %2521 = vmatpush3.msra.mxu1 %v459_v45  ;;  %650 = vmatprep.subr.mxu0 %v3345_v44 }
  0xb6   :  { %651 = vmatpush1.msra.mxu0 %v3352_v46  ;;  %2522 = vmatprep.subr.mxu1 %v4340_v1 }
  0xb7   :  { %293 = vmatprep.mubr.f32.mxu0 %v4340_v1  ;;  %2523 = vmatpush3.msra.mxu1 %v454_v47  ;;  %v185_v47 = vrot.slane %v176_v30, %v184_v34 }
  0xb8   :  { %652 = vmatprep.subr.mxu0 %v3357_v48  ;;  %2231 = vmatmul.mubr.msk.f32.gmra.mxu0 %vm110_vm13, %v3095_v12 }
  0xb9   :  { %2524 = vmatprep.subr.mxu1 %v4340_v1  ;;  %653 = vmatpush1.msra.mxu0 %v3361_v49 }
  0xba   :  { %2525 = vmatpush3.msra.mxu1 %v449_v54  ;;  %654 = vmatprep.subr.mxu0 %v3364_v50 }
  0xbb   :  { %2526 = vmatprep.subr.mxu1 %v4340_v1  ;;  %655 = vmatpush1.msra.mxu0 %v3375_v53 }
  0xbc   :  { %299 = vmatprep.mubr.f32.mxu0 %v4340_v1  ;;  %2527 = vmatpush3.msra.mxu1 %v444_v56 }
  0xbd   :  { %656 = vmatprep.subr.mxu0 %v3380_v55  ;;  %2232 = vmatmul.mubr.msk.f32.gmra.mxu0 %vm111_vm15, %v3095_v12  ;;  %v3468_v12 = vld [vmem:[#allocation5 + $0x70] sm:$0xff] }
  0xbe   :  { %657 = vmatpush1.msra.mxu0 %v3384_v57  ;;  %692 = vmatprep.mubr.f32.mxu0 %v4340_v1 }
  0xbf   :  { %658 = vmatprep.subr.mxu0 %v3388_v58  ;;  %2528 = vmatprep.mubr.msk.f32.mxu1 %vm3096_vm2, %v4340_v1 }
  0xc0   :  { %659 = vmatpush1.msra.mxu0 %v3395_v59  ;;  %2531 = vmatprep.subr.mxu1 %v4340_v1 }
  0xc1   :  { %693 = vmatmul.mubr.f32.vlgmr.msra.gmra.mxu0 %v4340_v1  ;;  %2529 = vmatmul.mubr.msk.f32.vlgmr.msra.gmra.mxu1 %vm481_vm1, %v2241_v60 }
  0xc2   :  { %2532 = vmatpush3.msra.mxu1 %v3403_v61  ;;  %2563 = vmatprep.mubr.msk.f32.mxu1 %vm3096_vm2, %v4340_v1 }
  0xc3   :  { %2533 = vmatprep.subr.mxu1 %v4340_v1  ;;  %791 = vmatprep.subr.mxu0 %v3218_v5 }
  0xc4   :  { %2534 = vmatpush3.msra.mxu1 %v3408_v62  ;;  %792 = vmatpush1.msra.mxu0 %v3225_v10 }
  0xc5   :  { %2535 = vmatprep.subr.mxu1 %v4340_v1  ;;  %793 = vmatprep.subr.mxu0 %v3228_v11 }
  0xc6   :  { %2536 = vmatpush3.msra.mxu1 %v3414_v63  ;;  %794 = vmatpush1.msra.mxu0 %v3232_v13 }
  0xc7   :  { %2537 = vmatprep.subr.mxu1 %v4340_v1  ;;  %795 = vmatprep.subr.mxu0 %v3236_v14 }
  0xc8   :  { %2538 = vmatpush3.msra.mxu1 %v3420_v0  ;;  %796 = vmatpush1.msra.mxu0 %v3239_v17 }
  0xc9   :  { %2539 = vmatprep.subr.mxu1 %v4340_v1  ;;  %797 = vmatprep.subr.mxu0 %v3243_v18 }
  0xca   :  { %2540 = vmatpush3.msra.mxu1 %v3426_v2  ;;  %798 = vmatpush1.msra.mxu0 %v3248_v19 }
  0xcb   :  { %2541 = vmatprep.subr.mxu1 %v4340_v1  ;;  %799 = vmatprep.subr.mxu0 %v3252_v20 }
  0xcc   :  { %2542 = vmatpush3.msra.mxu1 %v3432_v3  ;;  %800 = vmatpush1.msra.mxu0 %v3259_v23 }
  0xcd   :  { %2543 = vmatprep.subr.mxu1 %v4340_v1  ;;  %801 = vmatprep.subr.mxu0 %v3266_v24 }
  0xce   :  { %2544 = vmatpush3.msra.mxu1 %v3438_v4  ;;  %802 = vmatpush1.msra.mxu0 %v3272_v25 }
  0xcf   :  { %2545 = vmatprep.subr.mxu1 %v4340_v1  ;;  %803 = vmatprep.subr.mxu0 %v3278_v26 }
  0xd0   :  { %2546 = vmatpush3.msra.mxu1 %v3444_v6  ;;  %804 = vmatpush1.msra.mxu0 %v3286_v29 }
  0xd1   :  { %2547 = vmatprep.subr.mxu1 %v4340_v1  ;;  %805 = vmatprep.subr.mxu0 %v3298_v31 }
  0xd2   :  { %2548 = vmatpush3.msra.mxu1 %v3450_v7  ;;  %806 = vmatpush1.msra.mxu0 %v3305_v32 }
  0xd3   :  { %2549 = vmatprep.subr.mxu1 %v4340_v1  ;;  %807 = vmatprep.subr.mxu0 %v3313_v35 }
  0xd4   :  { %2550 = vmatpush3.msra.mxu1 %v3456_v8  ;;  %808 = vmatpush1.msra.mxu0 %v3321_v38 }
  0xd5   :  { %2551 = vmatprep.subr.mxu1 %v4340_v1  ;;  %809 = vmatprep.subr.mxu0 %v3324_v39 }
  0xd6   :  { %2552 = vmatpush3.msra.mxu1 %v3462_v9  ;;  %810 = vmatpush1.msra.mxu0 %v3333_v40 }
  0xd7   :  { %2553 = vmatprep.subr.mxu1 %v4340_v1  ;;  %811 = vmatprep.subr.mxu0 %v3338_v42 }
  0xd8   :  { %2554 = vmatpush3.msra.mxu1 %v3468_v12  ;;  %812 = vmatpush1.msra.mxu0 %v3342_v43 }
  0xd9   :  { %2555 = vmatprep.subr.mxu1 %v4340_v1  ;;  %813 = vmatprep.subr.mxu0 %v3345_v44 }
  0xda   :  { %2556 = vmatpush3.msra.mxu1 %v3474_v15  ;;  %814 = vmatpush1.msra.mxu0 %v3352_v46 }
  0xdb   :  { %2557 = vmatprep.subr.mxu1 %v4340_v1  ;;  %815 = vmatprep.subr.mxu0 %v3357_v48 }
  0xdc   :  { %2558 = vmatpush3.msra.mxu1 %v3480_v16  ;;  %816 = vmatpush1.msra.mxu0 %v3361_v49 }
  0xdd   :  { %2559 = vmatprep.subr.mxu1 %v4340_v1  ;;  %817 = vmatprep.subr.mxu0 %v3364_v50 }
  0xde   :  { %2560 = vmatpush3.msra.mxu1 %v3486_v21  ;;  %818 = vmatpush1.msra.mxu0 %v3375_v53 }
  0xdf   :  { %2561 = vmatprep.subr.mxu1 %v4340_v1  ;;  %819 = vmatprep.subr.mxu0 %v3380_v55 }
  0xe0   :  { %2562 = vmatpush3.msra.mxu1 %v3492_v22  ;;  %820 = vmatpush1.msra.mxu0 %v3384_v57 }
  0xe1   :  { %2564 = vmatmul.mubr.f32.vlgmr.msra.gmra.mxu1 %v4340_v1  ;;  %2566 = vmatprep.subr.mxu1 %v4340_v1 }
  0xe2   :  { %2567 = vmatpush3.msra.mxu1 %v3403_v61  ;;  %821 = vmatprep.subr.mxu0 %v3388_v58 }
  0xe3   :  { %2568 = vmatprep.subr.mxu1 %v4340_v1  ;;  %822 = vmatpush1.msra.mxu0 %v3395_v59 }
  0xe4   :  { %2569 = vmatpush3.msra.mxu1 %v3408_v62  ;;  %855 = vmatprep.mubr.f32.mxu0 %v4340_v1 }
  0xe5   :  { %2570 = vmatprep.subr.mxu1 %v4340_v1  ;;  %2598 = vmatprep.mubr.msk.f32.mxu1 %vm3096_vm2, %v4340_v1 }
  0xe6   :  { %2571 = vmatpush3.msra.mxu1 %v3414_v63  ;;  %954 = vmatprep.subr.mxu0 %v3218_v5 }
  0xe7   :  { %2572 = vmatprep.subr.mxu1 %v4340_v1 }
  0xe8   :  { %2573 = vmatpush3.msra.mxu1 %v3420_v0 }
  0xe9   :  { %2574 = vmatprep.subr.mxu1 %v4340_v1 }
  0xea   :  { %2575 = vmatpush3.msra.mxu1 %v3426_v2 }
  0xeb   :  { %2576 = vmatprep.subr.mxu1 %v4340_v1 }
  0xec   :  { %2577 = vmatpush3.msra.mxu1 %v3432_v3 }
  0xed   :  { %2578 = vmatprep.subr.mxu1 %v4340_v1 }
  0xee   :  { %2579 = vmatpush3.msra.mxu1 %v3438_v4 }
  0xef   :  { %2580 = vmatprep.subr.mxu1 %v4340_v1 }
  0xf0   :  { %2581 = vmatpush3.msra.mxu1 %v3444_v6 }
  0xf1   :  { %2582 = vmatprep.subr.mxu1 %v4340_v1 }
  0xf2   :  { %2583 = vmatpush3.msra.mxu1 %v3450_v7 }
  0xf3   :  { %2584 = vmatprep.subr.mxu1 %v4340_v1 }
  0xf4   :  { %2585 = vmatpush3.msra.mxu1 %v3456_v8 }
  0xf5   :  { %2586 = vmatprep.subr.mxu1 %v4340_v1 }
  0xf6   :  { %2587 = vmatpush3.msra.mxu1 %v3462_v9 }
  0xf7   :  { %2588 = vmatprep.subr.mxu1 %v4340_v1 }
  0xf8   :  { %2589 = vmatpush3.msra.mxu1 %v3468_v12 }
  0xf9   :  { %2590 = vmatprep.subr.mxu1 %v4340_v1 }
  0xfa   :  { %2591 = vmatpush3.msra.mxu1 %v3474_v15 }
  0xfb   :  { %2592 = vmatprep.subr.mxu1 %v4340_v1 }
  0xfc   :  { %2593 = vmatpush3.msra.mxu1 %v3480_v16 }
  0xfd   :  { %2594 = vmatprep.subr.mxu1 %v4340_v1 }
  0xfe   :  { %2595 = vmatpush3.msra.mxu1 %v3486_v21 }
  0xff   :  { %2596 = vmatprep.subr.mxu1 %v4340_v1 }
 0x100   :  { %2597 = vmatpush3.msra.mxu1 %v3492_v22 }
 0x101   :  { %2601 = vmatprep.subr.mxu1 %v4340_v1 }
 0x15c   :  { %v259_v33 = vpop.f32.mrf.mxu0 }
 0x15e   :  { %v261_v37 = vpop.f32.mrf.mxu0 }
 0x15f   :  { %v262_v53 = vadd.f32 %v261_v37, %v185_v47 }
 0x160   :  { %v265_v45 = vpop.f32.mrf.mxu0 }
 0x161   :  { %v3551_v52 = vadd.f32 %v265_v45, %v181_v41  ;;  %v2502_v54 = vpop.f32.mrf.mxu1 }
 0x162   :  { %v3554_v56 = vadd.f32 %v2502_v54, %v3549_v36  ;;  %v267_v60 = vpop.f32.mrf.mxu0 }
 0x163   :  { %4382 = vst [vmem:[#allocation20_spill] sm:$0xff] %v3551_v52  ;;  %v3556_v1 = vadd.f32 %v267_v60, %v185_v47  ;;  %v3558_v5 = vpop.f32.mrf.mxu1 }
 0x164   :  { %4383 = vst [vmem:[#allocation21_spill] sm:$0xff] %v3554_v56  ;;  %v271_v22 = vpop.f32.mrf.mxu0  ;;  %v373_v37 = vadd.f32 %v3558_v5, %v3549_v36  ;;  %v4407_v5 = vmov 0.0  }
 0x165   :  { %4384 = vst [vmem:[#allocation22_spill] sm:$0xff] %v3556_v1  ;;  %v3560_v59 = vadd.f32 %v271_v22, %v181_v41  ;;  %v2505_v27 = vpop.f32.mrf.mxu1 }
 0x166   :  { %v3563_v58 = vadd.f32 %v2505_v27, %v3549_v36  ;;  %v273_v21 = vpop.f32.mrf.mxu0 }
 0x167   :  { %4385 = vst [vmem:[#allocation23_spill] sm:$0xff] %v3560_v59  ;;  %v3565_v30 = vadd.f32 %v273_v21, %v185_v47  ;;  %v382_v45 = vpop.f32.mrf.mxu1 }
 0x168   :  { %4386 = vst [vmem:[#allocation24_spill] sm:$0xff] %v3563_v58  ;;  %v3568_v52 = vadd.f32 %v382_v45, %v3549_v36  ;;  %v277_v54 = vpop.f32.mrf.mxu0 }
 0x169   :  { %4387 = vst [vmem:[#allocation25_spill] sm:$0xff] %v3565_v30  ;;  %v3570_v56 = vadd.f32 %v277_v54, %v181_v41  ;;  %v2508_v60 = vpop.f32.mrf.mxu1 }
 0x16a   :  { %4388 = vst [vmem:[#allocation26_spill] sm:$0xff] %v3568_v52  ;;  %v3573_v1 = vadd.f32 %v2508_v60, %v3549_v36  ;;  %v279_v22 = vpop.f32.mrf.mxu0 }
 0x16b   :  { %4389 = vst [vmem:[#allocation27_spill] sm:$0xff] %v3570_v56  ;;  %v3575_v59 = vadd.f32 %v279_v22, %v185_v47  ;;  %v392_v57 = vpop.f32.mrf.mxu1 }
 0x16c   :  { %4390 = vst [vmem:[#allocation28_spill] sm:$0xff] %v3573_v1  ;;  %v3578_v27 = vadd.f32 %v392_v57, %v3549_v36 }
 0x16d   :  { %4391 = vst [vmem:[#allocation29_spill] sm:$0xff] %v3575_v59 }
 0x16e   :  { %4392 = vst [vmem:[#allocation30_spill] sm:$0xff] %v3578_v27  ;;  %v283_v21 = vpop.f32.mrf.mxu0  ;;  %v2511_v58 = vpop.f32.mrf.mxu1 }
 0x16f   :  { %v3580_v30 = vadd.f32 %v283_v21, %v181_v41  ;;  %v3583_v45 = vadd.f32 %v2511_v58, %v3549_v36  ;;  %v611_v58 = vld [vmem:[%s4332_s5] sm:$0x7] }
 0x170   :  { %v285_v54 = vpop.f32.mrf.mxu0  ;;  %v402_v56 = vpop.f32.mrf.mxu1 }
 0x171   :  { %4393 = vst [vmem:[#allocation31_spill] sm:$0xff] %v3580_v30  ;;  %4394 = vst [vmem:[#allocation32_spill] sm:$0xff] %v3583_v45  ;;  %v3585_v52 = vadd.f32 %v285_v54, %v185_v47  ;;  %v3588_v60 = vadd.f32 %v402_v56, %v3549_v36  ;;  %v4408_v36 = vld [vmem:[#allocation12_spill] sm:$0xff] }
 0x173   :  { %4395 = vst [vmem:[#allocation33_spill] sm:$0xff] %v3585_v52  ;;  %4396 = vst [vmem:[#allocation34_spill] sm:$0xff] %v3588_v60  ;;  %v289_v22 = vpop.f32.mrf.mxu0  ;;  %v3601_v52 = vrot.slane %v611_v58, %v180_v28 }
 0x174   :  { %v3590_v1 = vadd.f32 %v289_v22, %v181_v41 }
 0x175   :  { %v291_v59 = vpop.f32.mrf.mxu0  ;;  %4401 = vst [vmem:[#allocation39_spill] sm:$0xff] %v3601_v52 }
 0x176   :  { %4397 = vst [vmem:[#allocation35_spill] sm:$0xff] %v3590_v1  ;;  %v3592_v57 = vadd.f32 %v291_v59, %v185_v47 }
 0x178   :  { %4398 = vst [vmem:[#allocation36_spill] sm:$0xff] %v3592_v57  ;;  %v295_v27 = vpop.f32.mrf.mxu0 }
 0x179   :  { %v3594_v55 = vadd.f32 %v295_v27, %v181_v41  ;;  %v3609_v27 = vrot.slane %v611_v58, %v184_v34  ;;  %v4405_v34 = vsub.s32 2, %v3367_v51 }
 0x17a   :  { %v297_v21 = vpop.f32.mrf.mxu0 }
 0x17b   :  { %4399 = vst [vmem:[#allocation37_spill] sm:$0xff] %v3594_v55  ;;  %v3599_v45 = vadd.f32 %v297_v21, %v185_v47  ;;  %v260_v55 = vadd.f32 %v259_v33, %v181_v41 }
 0x17d   :  { %4400 = vst [vmem:[#allocation38_spill] sm:$0xff] %v3599_v45  ;;  %v301_v54 = vpop.f32.mrf.mxu0 }
 0x17e   :  { %v3603_v56 = vadd.f32 %v301_v54, %v181_v41 }
 0x17f   :  { %v303_v22 = vpop.f32.mrf.mxu0 }
 0x180   :  { %4402 = vst [vmem:[#allocation40_spill] sm:$0xff] %v3603_v56  ;;  %v3605_v60 = vadd.f32 %v303_v22, %v185_v47 }
 0x181   :  { %v694_v59 = vpop.f32.mrf.mxu0  ;;  %v3607_v57 = vpop.f32.mrf.mxu1 }
 0x182   :  { %4403 = vst [vmem:[#allocation41_spill] sm:$0xff] %v3605_v60  ;;  %4404 = vst [vmem:[#allocation42_spill] sm:$0xff] %v3607_v57  ;;  %v695_v1 = vadd.f32 %v694_v59, %v3601_v52  ;;  %v3615_v57 = vrot.slane %v611_v58, %v4405_v34  ;;  %v4413_v34 = vld [vmem:[#allocation15_spill] sm:$0xff] }
 0x183   :  { %v696_v30 = vpop.f32.mrf.mxu0  ;;  %v2530_v16 = vpop.f32.mrf.mxu1 }
 0x184   :  { %v769_v21 = vadd.f32 %v695_v1, %v260_v55  ;;  %v697_v28 = vadd.f32 %v696_v30, %v3609_v27 }
 0x186   :  { %v2251_v45 = vmul.f32 -1.442695, %v769_v21  ;;  %v776_v54 = vadd.f32 %v697_v28, %v262_v53  ;;  %v4409_v21 = vld [vmem:[#allocation17_spill] sm:$0xff] }
 0x187   :  { %v4410_v28 = vld [vmem:[#allocation13_spill] sm:$0xff] }
 0x188   :  { %2889 = vpow2.f32 %v2251_v45  ;;  %v2252_v56 = vmul.f32 -1.442695, %v776_v54  ;;  %v4411_v54 = vld [vmem:[#allocation14_spill] sm:$0xff] }
 0x18a   :  { %2891 = vpow2.f32 %v2252_v56 }
 0x195   :  { %v2890_v22 = vpop.eup %2889 }
 0x196   :  { %v773_v60 = vadd.f32 1.0, %v2890_v22  ;;  %v4412_v22 = vld [vmem:[#allocation18_spill] sm:$0xff] }
 0x197   :  { %v2892_v33 = vpop.eup %2891 }
 0x198   :  { %2893 = vrcp.f32 %v773_v60  ;;  %v780_v59 = vadd.f32 1.0, %v2892_v33  ;;  %v4414_v33 = vld [vmem:[#allocation16_spill] sm:$0xff] }
 0x19a   :  { %2895 = vrcp.f32 %v780_v59  ;;  %v4416_v59 = vld [vmem:[#allocation11_spill] sm:$0xff] }
 0x1a1   :  { %v765_v41 = vpop.f32.mrf.mxu1 }
 0x1a2   :  { %v766_v1 = vadd.f32 %v765_v41, %v3615_v57  ;;  %v4415_v41 = vld [vmem:[#allocation19_spill] sm:$0xff] }
 0x1a3   :  { %v2565_v55 = vpop.f32.mrf.mxu1 }
 0x1a5   :  { %v2894_v16 = vpop.eup %2893 }
 0x1a6   :  { %v783_v53 = vmul.f32 %v2894_v16, %v766_v1 }
 0x1a7   :  { %v2896_v30 = vpop.eup %2895 }
 0x1a8   :  { %v784_v47 = vadd.f32 %v783_v53, %v373_v37  ;;  %v786_v45 = vsub.f32 1.0, %v2896_v30  ;;  %v788_v58 = vmul.f32 0.0, %v2896_v30 }
 0x1aa   :  { %2897 = vtanh.f32 %v784_v47  ;;  %v4417_v47 = vld [vmem:[#allocation20_spill] sm:$0xff] }
 0x1b7   :  { %v2898_v60 = vpop.eup %2897 }
 0x1b8   :  { %v787_v51 = vmul.f32 %v2898_v60, %v786_v45 }
 0x1ba   :  { %v3620_v56 = vadd.f32 %v788_v58, %v787_v51  ;;  %v4418_v51 = vld [vmem:[#allocation22_spill] sm:$0xff] }
 0x1bc   :  { %4406 = vst [vmem:[#allocation43_spill] sm:$0xff] %v3620_v56  ;;  %856 = vmatmul.mubr.f32.vlgmr.msra.gmra.mxu0 %v3620_v56  ;;  %2599 = vmatmul.mubr.f32.vlgmr.msra.gmra.mxu1 %v3620_v56 }
 0x1bd   :  { %955 = vmatpush1.msra.mxu0 %v3225_v10  ;;  %2602 = vmatpush3.msra.mxu1 %v3403_v61 }
 0x1be   :  { %956 = vmatprep.subr.mxu0 %v3228_v11  ;;  %2603 = vmatprep.subr.mxu1 %v4407_v5 }
 0x1bf   :  { %957 = vmatpush1.msra.mxu0 %v3232_v13  ;;  %2604 = vmatpush3.msra.mxu1 %v3408_v62 }
 0x1c0   :  { %958 = vmatprep.subr.mxu0 %v3236_v14  ;;  %2605 = vmatprep.subr.mxu1 %v4407_v5 }
 0x1c1   :  { %959 = vmatpush1.msra.mxu0 %v3239_v17  ;;  %2606 = vmatpush3.msra.mxu1 %v3414_v63 }
 0x1c2   :  { %960 = vmatprep.subr.mxu0 %v3243_v18  ;;  %2607 = vmatprep.subr.mxu1 %v4407_v5 }
 0x1c3   :  { %961 = vmatpush1.msra.mxu0 %v3248_v19  ;;  %2608 = vmatpush3.msra.mxu1 %v3420_v0 }
 0x1c4   :  { %962 = vmatprep.subr.mxu0 %v3252_v20  ;;  %2609 = vmatprep.subr.mxu1 %v4407_v5 }
 0x1c5   :  { %963 = vmatpush1.msra.mxu0 %v3259_v23  ;;  %2610 = vmatpush3.msra.mxu1 %v3426_v2 }
 0x1c6   :  { %964 = vmatprep.subr.mxu0 %v3266_v24  ;;  %2611 = vmatprep.subr.mxu1 %v4407_v5 }
 0x1c7   :  { %965 = vmatpush1.msra.mxu0 %v3272_v25  ;;  %2612 = vmatpush3.msra.mxu1 %v3432_v3 }
 0x1c8   :  { %966 = vmatprep.subr.mxu0 %v3278_v26  ;;  %2613 = vmatprep.subr.mxu1 %v4407_v5 }
 0x1c9   :  { %967 = vmatpush1.msra.mxu0 %v3286_v29  ;;  %2614 = vmatpush3.msra.mxu1 %v3438_v4 }
 0x1ca   :  { %968 = vmatprep.subr.mxu0 %v3298_v31  ;;  %2615 = vmatprep.subr.mxu1 %v4407_v5 }
 0x1cb   :  { %969 = vmatpush1.msra.mxu0 %v3305_v32  ;;  %2616 = vmatpush3.msra.mxu1 %v3444_v6 }
 0x1cc   :  { %970 = vmatprep.subr.mxu0 %v3313_v35  ;;  %2617 = vmatprep.subr.mxu1 %v4407_v5 }
 0x1cd   :  { %971 = vmatpush1.msra.mxu0 %v3321_v38  ;;  %2618 = vmatpush3.msra.mxu1 %v3450_v7 }
 0x1ce   :  { %972 = vmatprep.subr.mxu0 %v3324_v39  ;;  %2619 = vmatprep.subr.mxu1 %v4407_v5 }
 0x1cf   :  { %973 = vmatpush1.msra.mxu0 %v3333_v40  ;;  %2620 = vmatpush3.msra.mxu1 %v3456_v8 }
 0x1d0   :  { %974 = vmatprep.subr.mxu0 %v3338_v42  ;;  %2621 = vmatprep.subr.mxu1 %v4407_v5 }
 0x1d1   :  { %975 = vmatpush1.msra.mxu0 %v3342_v43  ;;  %2622 = vmatpush3.msra.mxu1 %v3462_v9 }
 0x1d2   :  { %976 = vmatprep.subr.mxu0 %v3345_v44  ;;  %2623 = vmatprep.subr.mxu1 %v4407_v5 }
 0x1d3   :  { %977 = vmatpush1.msra.mxu0 %v3352_v46  ;;  %2624 = vmatpush3.msra.mxu1 %v3468_v12 }
 0x1d4   :  { %978 = vmatprep.subr.mxu0 %v3357_v48  ;;  %2625 = vmatprep.subr.mxu1 %v4407_v5 }
 0x1d5   :  { %979 = vmatpush1.msra.mxu0 %v3361_v49  ;;  %2626 = vmatpush3.msra.mxu1 %v3474_v15 }
 0x1d6   :  { %980 = vmatprep.subr.mxu0 %v3364_v50  ;;  %2627 = vmatprep.subr.mxu1 %v4407_v5 }
 0x1d7   :  { %981 = vmatpush1.msra.mxu0 %v4408_v36  ;;  %2628 = vmatpush3.msra.mxu1 %v4409_v21 }
 0x1d8   :  { %982 = vmatprep.subr.mxu0 %v4410_v28  ;;  %2629 = vmatprep.subr.mxu1 %v4407_v5 }
 0x1d9   :  { %983 = vmatpush1.msra.mxu0 %v4411_v54  ;;  %2630 = vmatpush3.msra.mxu1 %v4412_v22 }
 0x1da   :  { %984 = vmatprep.subr.mxu0 %v4413_v34  ;;  %2631 = vmatprep.subr.mxu1 %v4407_v5 }
 0x1db   :  { %985 = vmatpush1.msra.mxu0 %v4414_v33  ;;  %1018 = vmatprep.mubr.f32.mxu0 %v4407_v5 }
 0x1dc   :  { %2632 = vmatpush3.msra.mxu1 %v4415_v41  ;;  %2633 = vmatprep.mubr.msk.f32.mxu1 %vm3096_vm2, %v4407_v5 }
 0x1dd   :  { %1117 = vmatprep.subr.mxu0 %v4416_v59  ;;  %2636 = vmatprep.subr.mxu1 %v4407_v5 }
 0x27c   :  { %v857_v1 = vpop.f32.mrf.mxu0  ;;  %v928_v55 = vpop.f32.mrf.mxu1 }
 0x27d   :  { %v858_v16 = vadd.f32 %v857_v1, %v3601_v52  ;;  %v929_v54 = vadd.f32 %v928_v55, %v3615_v57 }
 0x27e   :  { %v859_v37 = vpop.f32.mrf.mxu0  ;;  %v2600_v53 = vpop.f32.mrf.mxu1 }
 0x27f   :  { %v932_v30 = vadd.f32 %v858_v16, %v4417_v47  ;;  %v860_v60 = vadd.f32 %v859_v37, %v3609_v27  ;;  %v4419_v53 = vld [vmem:[#allocation21_spill] sm:$0xff] }
 0x281   :  { %v2253_v45 = vmul.f32 -1.442695, %v932_v30  ;;  %v939_v58 = vadd.f32 %v860_v60, %v4418_v51 }
 0x283   :  { %2899 = vpow2.f32 %v2253_v45  ;;  %v2254_v41 = vmul.f32 -1.442695, %v939_v58 }
 0x285   :  { %2901 = vpow2.f32 %v2254_v41 }
 0x290   :  { %v2900_v33 = vpop.eup %2899 }
 0x291   :  { %v936_v59 = vadd.f32 1.0, %v2900_v33 }
 0x292   :  { %v2902_v34 = vpop.eup %2901 }
 0x293   :  { %2903 = vrcp.f32 %v936_v59  ;;  %v943_v22 = vadd.f32 1.0, %v2902_v34 }
 0x295   :  { %2905 = vrcp.f32 %v943_v22 }
 0x2a0   :  { %v2904_v1 = vpop.eup %2903 }
 0x2a1   :  { %v946_v52 = vmul.f32 %v2904_v1, %v929_v54  ;;  %v4428_v54 = vld [vmem:[#allocation25_spill] sm:$0xff] }
 0x2a2   :  { %v2906_v47 = vpop.eup %2905 }
 0x2a3   :  { %v947_v16 = vadd.f32 %v946_v52, %v4419_v53  ;;  %v949_v37 = vsub.f32 1.0, %v2906_v47  ;;  %v951_v60 = vmul.f32 %v2906_v47, %v3620_v56 }
 0x2a5   :  { %2907 = vtanh.f32 %v947_v16  ;;  %v4429_v16 = vld [vmem:[#allocation26_spill] sm:$0xff] }
 0x2b2   :  { %v2908_v30 = vpop.eup %2907 }
 0x2b3   :  { %v950_v45 = vmul.f32 %v2908_v30, %v949_v37 }
 0x2b5   :  { %v3698_v41 = vadd.f32 %v951_v60, %v950_v45 }
 0x2b7   :  { %4420 = vst [vmem:[#allocation12_spill] sm:$0xff] %v3698_v41  ;;  %1019 = vmatmul.mubr.f32.vlgmr.msra.gmra.mxu0 %v3698_v41  ;;  %2634 = vmatmul.mubr.f32.vlgmr.msra.gmra.mxu1 %v3698_v41 }
 0x2b8   :  { %1118 = vmatpush1.msra.mxu0 %v3225_v10  ;;  %2637 = vmatpush3.msra.mxu1 %v3403_v61  ;;  %v4421_v10 = vld [vmem:[#allocation14_spill] sm:$0xff] }
 0x2b9   :  { %1119 = vmatprep.subr.mxu0 %v3228_v11  ;;  %2638 = vmatprep.subr.mxu1 %v4407_v5  ;;  %v4422_v11 = vld [vmem:[#allocation18_spill] sm:$0xff] }
 0x2ba   :  { %1120 = vmatpush1.msra.mxu0 %v3232_v13  ;;  %2639 = vmatpush3.msra.mxu1 %v3408_v62  ;;  %v4423_v13 = vld [vmem:[#allocation15_spill] sm:$0xff] }
 0x2bb   :  { %1121 = vmatprep.subr.mxu0 %v3236_v14  ;;  %2640 = vmatprep.subr.mxu1 %v4407_v5  ;;  %v4424_v14 = vld [vmem:[#allocation16_spill] sm:$0xff] }
 0x2bc   :  { %1122 = vmatpush1.msra.mxu0 %v3239_v17  ;;  %2641 = vmatpush3.msra.mxu1 %v3414_v63  ;;  %v4425_v17 = vld [vmem:[#allocation19_spill] sm:$0xff] }
 0x2bd   :  { %1123 = vmatprep.subr.mxu0 %v3243_v18  ;;  %2642 = vmatprep.subr.mxu1 %v4407_v5  ;;  %v3767_v18 = vld [vmem:[#allocation5 + $0x170] sm:$0xff] }
 0x2be   :  { %1124 = vmatpush1.msra.mxu0 %v3248_v19  ;;  %2643 = vmatpush3.msra.mxu1 %v3420_v0 }
 0x2bf   :  { %1125 = vmatprep.subr.mxu0 %v3252_v20  ;;  %2644 = vmatprep.subr.mxu1 %v4407_v5 }
 0x2c0   :  { %1126 = vmatpush1.msra.mxu0 %v3259_v23  ;;  %2645 = vmatpush3.msra.mxu1 %v3426_v2  ;;  %v4426_v23 = vld [vmem:[#allocation39_spill] sm:$0xff] }
 0x2c1   :  { %1127 = vmatprep.subr.mxu0 %v3266_v24  ;;  %2646 = vmatprep.subr.mxu1 %v4407_v5 }
 0x2c2   :  { %1128 = vmatpush1.msra.mxu0 %v3272_v25  ;;  %2647 = vmatpush3.msra.mxu1 %v3432_v3 }
 0x2c3   :  { %1129 = vmatprep.subr.mxu0 %v3278_v26  ;;  %2648 = vmatprep.subr.mxu1 %v4407_v5 }
 0x2c4   :  { %1130 = vmatpush1.msra.mxu0 %v3286_v29  ;;  %2649 = vmatpush3.msra.mxu1 %v3438_v4  ;;  %v4427_v29 = vld [vmem:[#allocation23_spill] sm:$0xff] }
 0x2c5   :  { %1131 = vmatprep.subr.mxu0 %v3298_v31  ;;  %2650 = vmatprep.subr.mxu1 %v4407_v5 }
 0x2c6   :  { %1132 = vmatpush1.msra.mxu0 %v3305_v32  ;;  %2651 = vmatpush3.msra.mxu1 %v3444_v6 }
 0x2c7   :  { %1133 = vmatprep.subr.mxu0 %v3313_v35  ;;  %2652 = vmatprep.subr.mxu1 %v4407_v5 }
 0x2c8   :  { %1134 = vmatpush1.msra.mxu0 %v3321_v38  ;;  %2653 = vmatpush3.msra.mxu1 %v3450_v7 }
 0x2c9   :  { %1135 = vmatprep.subr.mxu0 %v3324_v39  ;;  %2654 = vmatprep.subr.mxu1 %v4407_v5 }
 0x2ca   :  { %1136 = vmatpush1.msra.mxu0 %v3333_v40  ;;  %2655 = vmatpush3.msra.mxu1 %v3456_v8 }
 0x2cb   :  { %1137 = vmatprep.subr.mxu0 %v3338_v42  ;;  %2656 = vmatprep.subr.mxu1 %v4407_v5 }
 0x2cc   :  { %1138 = vmatpush1.msra.mxu0 %v3342_v43  ;;  %2657 = vmatpush3.msra.mxu1 %v3462_v9 }
 0x2cd   :  { %1139 = vmatprep.subr.mxu0 %v3345_v44  ;;  %2658 = vmatprep.subr.mxu1 %v4407_v5 }
 0x2ce   :  { %1140 = vmatpush1.msra.mxu0 %v3352_v46  ;;  %2659 = vmatpush3.msra.mxu1 %v3468_v12 }
 0x2cf   :  { %1141 = vmatprep.subr.mxu0 %v3357_v48  ;;  %2660 = vmatprep.subr.mxu1 %v4407_v5 }
 0x2d0   :  { %1142 = vmatpush1.msra.mxu0 %v3361_v49  ;;  %2661 = vmatpush3.msra.mxu1 %v3474_v15 }
 0x2d1   :  { %1143 = vmatprep.subr.mxu0 %v3364_v50  ;;  %2662 = vmatprep.subr.mxu1 %v4407_v5 }
 0x2d2   :  { %1144 = vmatpush1.msra.mxu0 %v4408_v36  ;;  %2663 = vmatpush3.msra.mxu1 %v4409_v21 }
 0x2d3   :  { %1145 = vmatprep.subr.mxu0 %v4410_v28  ;;  %2664 = vmatprep.subr.mxu1 %v4407_v5 }
 0x2d4   :  { %1146 = vmatpush1.msra.mxu0 %v4421_v10  ;;  %2665 = vmatpush3.msra.mxu1 %v4422_v11 }
 0x2d5   :  { %1147 = vmatprep.subr.mxu0 %v4423_v13  ;;  %2666 = vmatprep.subr.mxu1 %v4407_v5 }
 0x2d6   :  { %1148 = vmatpush1.msra.mxu0 %v4424_v14  ;;  %1181 = vmatprep.mubr.f32.mxu0 %v4407_v5 }
 0x2d7   :  { %2667 = vmatpush3.msra.mxu1 %v4425_v17  ;;  %2668 = vmatprep.mubr.msk.f32.mxu1 %vm3096_vm2, %v4407_v5 }
 0x2d8   :  { %1280 = vmatprep.subr.mxu0 %v3767_v18  ;;  %2671 = vmatprep.subr.mxu1 %v4407_v5 }
 0x377   :  { %v1020_v19 = vpop.f32.mrf.mxu0  ;;  %v1091_v20 = vpop.f32.mrf.mxu1 }
 0x378   :  { %v1021_v24 = vadd.f32 %v1020_v19, %v4426_v23  ;;  %v1092_v59 = vadd.f32 %v1091_v20, %v3615_v57  ;;  %v3786_v20 = vld [vmem:[#allocation5 + $0x158] sm:$0xff] }
 0x379   :  { %v1022_v25 = vpop.f32.mrf.mxu0  ;;  %v2635_v26 = vpop.f32.mrf.mxu1 }
 0x37a   :  { %v1095_v31 = vadd.f32 %v1021_v24, %v4427_v29  ;;  %v1023_v52 = vadd.f32 %v1022_v25, %v3609_v27  ;;  %v3782_v25 = vld [vmem:[#allocation5 + $0x168] sm:$0xff]  ;;  %v3790_v26 = vld [vmem:[#allocation5 + $0x150] sm:$0xff]  ;;  %v3794_v29 = vld [vmem:[#allocation5 + $0x140] sm:$0xff] }
 0x37c   :  { %v2255_v32 = vmul.f32 -1.442695, %v1095_v31  ;;  %v1102_v22 = vadd.f32 %v1023_v52, %v4428_v54  ;;  %v3798_v31 = vld [vmem:[#allocation5 + $0x138] sm:$0xff]  ;;  %v3806_v52 = vld [vmem:[#allocation5 + $0x120] sm:$0xff]  ;;  %v3810_v54 = vld [vmem:[#allocation5 + $0x110] sm:$0xff] }
 0x37e   :  { %2909 = vpow2.f32 %v2255_v32  ;;  %v2256_v34 = vmul.f32 -1.442695, %v1102_v22  ;;  %v3802_v32 = vld [vmem:[#allocation5 + $0x128] sm:$0xff] }
 0x37f   :  { %v3814_v22 = vld [vmem:[#allocation5 + $0x108] sm:$0xff] }
 0x380   :  { %2911 = vpow2.f32 %v2256_v34  ;;  %v3818_v34 = vld [vmem:[#allocation5 + $0xf8] sm:$0xff] }
 0x38b   :  { %v2910_v33 = vpop.eup %2909 }
 0x38c   :  { %v1099_v55 = vadd.f32 1.0, %v2910_v33  ;;  %v3822_v33 = vld [vmem:[#allocation5 + $0xf0] sm:$0xff] }
 0x38d   :  { %v2912_v51 = vpop.eup %2911 }
 0x38e   :  { %2913 = vrcp.f32 %v1099_v55  ;;  %v1106_v58 = vadd.f32 1.0, %v2912_v51  ;;  %v3826_v55 = vld [vmem:[#allocation5 + $0xe0] sm:$0xff]  ;;  %v3830_v51 = vld [vmem:[#allocation5 + $0xd8] sm:$0xff] }
 0x390   :  { %2915 = vrcp.f32 %v1106_v58  ;;  %v3834_v58 = vld [vmem:[#allocation5 + $0xc8] sm:$0xff] }
 0x39b   :  { %v2914_v1 = vpop.eup %2913 }
 0x39c   :  { %v1109_v53 = vmul.f32 %v2914_v1, %v1092_v59  ;;  %v3838_v59 = vld [vmem:[#allocation5 + $0xc0] sm:$0xff] }
 0x39d   :  { %v2916_v37 = vpop.eup %2915 }
 0x39e   :  { %v1110_v47 = vadd.f32 %v1109_v53, %v4429_v16  ;;  %v1112_v30 = vsub.f32 1.0, %v2916_v37  ;;  %v1114_v19 = vmul.f32 %v2916_v37, %v3698_v41  ;;  %v4444_v41 = vld [vmem:[#allocation36_spill] sm:$0xff] }
 0x3a0   :  { %2917 = vtanh.f32 %v1110_v47  ;;  %v4433_v47 = vld [vmem:[#allocation24_spill] sm:$0xff] }
 0x3ad   :  { %v2918_v45 = vpop.eup %2917 }
 0x3ae   :  { %v1113_v60 = vmul.f32 %v2918_v45, %v1112_v30 }
 0x3b0   :  { %v3778_v24 = vadd.f32 %v1114_v19, %v1113_v60 }
 0x3b2   :  { %4430 = vst [vmem:[#allocation17_spill] sm:$0xff] %v3778_v24  ;;  %1182 = vmatmul.mubr.f32.vlgmr.msra.gmra.mxu0 %v3778_v24  ;;  %2669 = vmatmul.mubr.f32.vlgmr.msra.gmra.mxu1 %v3778_v24 }
 0x3b3   :  { %1281 = vmatpush1.msra.mxu0 %v3782_v25  ;;  %2672 = vmatpush3.msra.mxu1 %v3403_v61 }
 0x3b4   :  { %1282 = vmatprep.subr.mxu0 %v3786_v20  ;;  %2673 = vmatprep.subr.mxu1 %v4407_v5 }
 0x3b5   :  { %1283 = vmatpush1.msra.mxu0 %v3790_v26  ;;  %2674 = vmatpush3.msra.mxu1 %v3408_v62 }
 0x3b6   :  { %1284 = vmatprep.subr.mxu0 %v3794_v29  ;;  %2675 = vmatprep.subr.mxu1 %v4407_v5 }
 0x3b7   :  { %1285 = vmatpush1.msra.mxu0 %v3798_v31  ;;  %2676 = vmatpush3.msra.mxu1 %v3414_v63 }
 0x3b8   :  { %1286 = vmatprep.subr.mxu0 %v3802_v32  ;;  %2677 = vmatprep.subr.mxu1 %v4407_v5 }
 0x3b9   :  { %1287 = vmatpush1.msra.mxu0 %v3806_v52  ;;  %2678 = vmatpush3.msra.mxu1 %v3420_v0 }
 0x3ba   :  { %1288 = vmatprep.subr.mxu0 %v3810_v54  ;;  %2679 = vmatprep.subr.mxu1 %v4407_v5 }
 0x3bb   :  { %1289 = vmatpush1.msra.mxu0 %v3814_v22  ;;  %2680 = vmatpush3.msra.mxu1 %v3426_v2 }
 0x3bc   :  { %1290 = vmatprep.subr.mxu0 %v3818_v34  ;;  %2681 = vmatprep.subr.mxu1 %v4407_v5 }
 0x3bd   :  { %1291 = vmatpush1.msra.mxu0 %v3822_v33  ;;  %2682 = vmatpush3.msra.mxu1 %v3432_v3 }
 0x3be   :  { %1292 = vmatprep.subr.mxu0 %v3826_v55  ;;  %2683 = vmatprep.subr.mxu1 %v4407_v5 }
 0x3bf   :  { %1293 = vmatpush1.msra.mxu0 %v3830_v51  ;;  %2684 = vmatpush3.msra.mxu1 %v3438_v4 }
 0x3c0   :  { %1294 = vmatprep.subr.mxu0 %v3834_v58  ;;  %2685 = vmatprep.subr.mxu1 %v4407_v5 }
 0x3c1   :  { %1295 = vmatpush1.msra.mxu0 %v3838_v59  ;;  %2686 = vmatpush3.msra.mxu1 %v3444_v6 }
 0x3c2   :  { %1296 = vmatprep.subr.mxu0 %v3313_v35  ;;  %2687 = vmatprep.subr.mxu1 %v4407_v5 }
 0x3c3   :  { %1297 = vmatpush1.msra.mxu0 %v3321_v38  ;;  %2688 = vmatpush3.msra.mxu1 %v3450_v7 }
 0x3c4   :  { %1298 = vmatprep.subr.mxu0 %v3324_v39  ;;  %2689 = vmatprep.subr.mxu1 %v4407_v5 }
 0x3c5   :  { %1299 = vmatpush1.msra.mxu0 %v3333_v40  ;;  %2690 = vmatpush3.msra.mxu1 %v3456_v8 }
 0x3c6   :  { %1300 = vmatprep.subr.mxu0 %v3338_v42  ;;  %2691 = vmatprep.subr.mxu1 %v4407_v5 }
 0x3c7   :  { %1301 = vmatpush1.msra.mxu0 %v3342_v43  ;;  %2692 = vmatpush3.msra.mxu1 %v3462_v9  ;;  %v4431_v43 = vld [vmem:[#allocation27_spill] sm:$0xff] }
 0x3c8   :  { %1302 = vmatprep.subr.mxu0 %v3345_v44  ;;  %2693 = vmatprep.subr.mxu1 %v4407_v5 }
 0x3c9   :  { %1303 = vmatpush1.msra.mxu0 %v3352_v46  ;;  %2694 = vmatpush3.msra.mxu1 %v3468_v12 }
 0x3ca   :  { %1304 = vmatprep.subr.mxu0 %v3357_v48  ;;  %2695 = vmatprep.subr.mxu1 %v4407_v5 }
 0x3cb   :  { %1305 = vmatpush1.msra.mxu0 %v3361_v49  ;;  %2696 = vmatpush3.msra.mxu1 %v3474_v15  ;;  %v4432_v49 = vld [vmem:[#allocation29_spill] sm:$0xff] }
 0x3cc   :  { %1306 = vmatprep.subr.mxu0 %v3364_v50  ;;  %2697 = vmatprep.subr.mxu1 %v4407_v5 }
 0x3cd   :  { %1307 = vmatpush1.msra.mxu0 %v4408_v36  ;;  %2698 = vmatpush3.msra.mxu1 %v4409_v21 }
 0x3ce   :  { %1308 = vmatprep.subr.mxu0 %v4410_v28  ;;  %2699 = vmatprep.subr.mxu1 %v4407_v5 }
 0x3cf   :  { %1309 = vmatpush1.msra.mxu0 %v4421_v10  ;;  %2700 = vmatpush3.msra.mxu1 %v4422_v11 }
 0x3d0   :  { %1310 = vmatprep.subr.mxu0 %v4423_v13  ;;  %2701 = vmatprep.subr.mxu1 %v4407_v5 }
 0x3d1   :  { %1311 = vmatpush1.msra.mxu0 %v4424_v14  ;;  %1344 = vmatprep.mubr.f32.mxu0 %v4407_v5 }
 0x3d2   :  { %2702 = vmatpush3.msra.mxu1 %v4425_v17  ;;  %2703 = vmatprep.mubr.msk.f32.mxu1 %vm3096_vm2, %v4407_v5 }
 0x3d3   :  { %1443 = vmatprep.subr.mxu0 %v3767_v18  ;;  %2706 = vmatprep.subr.mxu1 %v4407_v5 }
 0x472   :  { %v1183_v35 = vpop.f32.mrf.mxu0  ;;  %v1254_v38 = vpop.f32.mrf.mxu1 }
 0x473   :  { %v1184_v39 = vadd.f32 %v1183_v35, %v4426_v23  ;;  %v1255_v1 = vadd.f32 %v1254_v38, %v3615_v57  ;;  %v3964_v38 = vld [vmem:[#allocation5 + $0x30] sm:$0xff] }
 0x474   :  { %v1185_v40 = vpop.f32.mrf.mxu0  ;;  %v2670_v42 = vpop.f32.mrf.mxu1 }
 0x475   :  { %v1258_v44 = vadd.f32 %v1184_v39, %v4431_v43  ;;  %v1186_v48 = vadd.f32 %v1185_v40, %v3609_v27  ;;  %v3972_v40 = vld [vmem:[#allocation5 + $0x18] sm:$0xff]  ;;  %v3980_v42 = vld [vmem:[#allocation5] sm:$0xff] }
 0x476   :  { %4435 = vst [vmem:[#allocation11_spill] sm:$0xff] %v3972_v40  ;;  %4437 = vst [vmem:[#allocation22_spill] sm:$0xff] %v3980_v42 }
 0x477   :  { %v2257_v46 = vmul.f32 -1.442695, %v1258_v44  ;;  %v1265_v50 = vadd.f32 %v1186_v48, %v4432_v49  ;;  %v4438_v48 = vld [vmem:[#allocation31_spill] sm:$0xff] }
 0x479   :  { %2919 = vpow2.f32 %v2257_v46  ;;  %v2258_v36 = vmul.f32 -1.442695, %v1265_v50 }
 0x47b   :  { %2921 = vpow2.f32 %v2258_v36 }
 0x486   :  { %v2920_v28 = vpop.eup %2919 }
 0x487   :  { %v1262_v10 = vadd.f32 1.0, %v2920_v28 }
 0x488   :  { %v2922_v13 = vpop.eup %2921 }
 0x489   :  { %2923 = vrcp.f32 %v1262_v10  ;;  %v1269_v14 = vadd.f32 1.0, %v2922_v13 }
 0x48b   :  { %2925 = vrcp.f32 %v1269_v14 }
 0x496   :  { %v2924_v53 = vpop.eup %2923 }
 0x497   :  { %v1272_v16 = vmul.f32 %v2924_v53, %v1255_v1 }
 0x498   :  { %v2926_v30 = vpop.eup %2925 }
 0x499   :  { %v1273_v37 = vadd.f32 %v1272_v16, %v4433_v47  ;;  %v1275_v45 = vsub.f32 1.0, %v2926_v30  ;;  %v1277_v35 = vmul.f32 %v2926_v30, %v3778_v24  ;;  %v4440_v30 = vld [vmem:[#allocation30_spill] sm:$0xff] }
 0x49b   :  { %2927 = vtanh.f32 %v1273_v37 }
 0x4a8   :  { %v2928_v60 = vpop.eup %2927 }
 0x4a9   :  { %v1276_v19 = vmul.f32 %v2928_v60, %v1275_v45 }
 0x4ab   :  { %v3886_v39 = vadd.f32 %v1277_v35, %v1276_v19 }
 0x4ad   :  { %4434 = vst [vmem:[#allocation13_spill] sm:$0xff] %v3886_v39  ;;  %1345 = vmatmul.mubr.f32.vlgmr.msra.gmra.mxu0 %v3886_v39  ;;  %2704 = vmatmul.mubr.f32.vlgmr.msra.gmra.mxu1 %v3886_v39 }
 0x4ae   :  { %1444 = vmatpush1.msra.mxu0 %v3782_v25  ;;  %2707 = vmatpush3.msra.mxu1 %v3403_v61  ;;  %v3920_v61 = vld [vmem:[#allocation5 + $0xb0] sm:$0xff] }
 0x4af   :  { %1445 = vmatprep.subr.mxu0 %v3786_v20  ;;  %2708 = vmatprep.subr.mxu1 %v4407_v5 }
 0x4b0   :  { %1446 = vmatpush1.msra.mxu0 %v3790_v26  ;;  %2709 = vmatpush3.msra.mxu1 %v3408_v62  ;;  %v3924_v62 = vld [vmem:[#allocation5 + $0xa8] sm:$0xff] }
 0x4b1   :  { %1447 = vmatprep.subr.mxu0 %v3794_v29  ;;  %2710 = vmatprep.subr.mxu1 %v4407_v5 }
 0x4b2   :  { %1448 = vmatpush1.msra.mxu0 %v3798_v31  ;;  %2711 = vmatpush3.msra.mxu1 %v3414_v63  ;;  %v3928_v63 = vld [vmem:[#allocation5 + $0x98] sm:$0xff] }
 0x4b3   :  { %1449 = vmatprep.subr.mxu0 %v3802_v32  ;;  %2712 = vmatprep.subr.mxu1 %v4407_v5 }
 0x4b4   :  { %1450 = vmatpush1.msra.mxu0 %v3806_v52  ;;  %2713 = vmatpush3.msra.mxu1 %v3420_v0  ;;  %v3932_v0 = vld [vmem:[#allocation5 + $0x90] sm:$0xff] }
 0x4b5   :  { %1451 = vmatprep.subr.mxu0 %v3810_v54  ;;  %2714 = vmatprep.subr.mxu1 %v4407_v5 }
 0x4b6   :  { %1452 = vmatpush1.msra.mxu0 %v3814_v22  ;;  %2715 = vmatpush3.msra.mxu1 %v3426_v2  ;;  %v3936_v2 = vld [vmem:[#allocation5 + $0x80] sm:$0xff] }
 0x4b7   :  { %1453 = vmatprep.subr.mxu0 %v3818_v34  ;;  %2716 = vmatprep.subr.mxu1 %v4407_v5 }
 0x4b8   :  { %1454 = vmatpush1.msra.mxu0 %v3822_v33  ;;  %2717 = vmatpush3.msra.mxu1 %v3432_v3  ;;  %v3940_v3 = vld [vmem:[#allocation5 + $0x78] sm:$0xff] }
 0x4b9   :  { %1455 = vmatprep.subr.mxu0 %v3826_v55  ;;  %2718 = vmatprep.subr.mxu1 %v4407_v5 }
 0x4ba   :  { %1456 = vmatpush1.msra.mxu0 %v3830_v51  ;;  %2719 = vmatpush3.msra.mxu1 %v3438_v4  ;;  %v3944_v4 = vld [vmem:[#allocation5 + $0x68] sm:$0xff] }
 0x4bb   :  { %1457 = vmatprep.subr.mxu0 %v3834_v58  ;;  %2720 = vmatprep.subr.mxu1 %v4407_v5 }
 0x4bc   :  { %1458 = vmatpush1.msra.mxu0 %v3838_v59  ;;  %2721 = vmatpush3.msra.mxu1 %v3444_v6  ;;  %v3948_v6 = vld [vmem:[#allocation5 + $0x60] sm:$0xff] }
 0x4bd   :  { %1459 = vmatprep.subr.mxu0 %v3920_v61  ;;  %2722 = vmatprep.subr.mxu1 %v4407_v5 }
 0x4be   :  { %1460 = vmatpush1.msra.mxu0 %v3924_v62  ;;  %2723 = vmatpush3.msra.mxu1 %v3450_v7  ;;  %v3952_v7 = vld [vmem:[#allocation5 + $0x50] sm:$0xff] }
 0x4bf   :  { %1461 = vmatprep.subr.mxu0 %v3928_v63  ;;  %2724 = vmatprep.subr.mxu1 %v4407_v5 }
 0x4c0   :  { %1462 = vmatpush1.msra.mxu0 %v3932_v0  ;;  %2725 = vmatpush3.msra.mxu1 %v3456_v8  ;;  %v3956_v8 = vld [vmem:[#allocation5 + $0x48] sm:$0xff] }
 0x4c1   :  { %1463 = vmatprep.subr.mxu0 %v3936_v2  ;;  %2726 = vmatprep.subr.mxu1 %v4407_v5 }
 0x4c2   :  { %1464 = vmatpush1.msra.mxu0 %v3940_v3  ;;  %2727 = vmatpush3.msra.mxu1 %v3462_v9  ;;  %v3960_v9 = vld [vmem:[#allocation5 + $0x38] sm:$0xff] }
 0x4c3   :  { %1465 = vmatprep.subr.mxu0 %v3944_v4  ;;  %2728 = vmatprep.subr.mxu1 %v4407_v5 }
 0x4c4   :  { %1466 = vmatpush1.msra.mxu0 %v3948_v6  ;;  %2729 = vmatpush3.msra.mxu1 %v3468_v12  ;;  %v3968_v12 = vld [vmem:[#allocation5 + $0x20] sm:$0xff] }
 0x4c5   :  { %1467 = vmatprep.subr.mxu0 %v3952_v7  ;;  %2730 = vmatprep.subr.mxu1 %v4407_v5 }
 0x4c6   :  { %1468 = vmatpush1.msra.mxu0 %v3956_v8  ;;  %2731 = vmatpush3.msra.mxu1 %v3474_v15  ;;  %v3976_v15 = vld [vmem:[#allocation5 + $0x8] sm:$0xff] }
 0x4c7   :  { %1469 = vmatprep.subr.mxu0 %v3960_v9  ;;  %2732 = vmatprep.subr.mxu1 %v4407_v5  ;;  %4436 = vst [vmem:[#allocation20_spill] sm:$0xff] %v3976_v15 }
 0x4c8   :  { %1470 = vmatpush1.msra.mxu0 %v3964_v38  ;;  %2733 = vmatpush3.msra.mxu1 %v4409_v21 }
 0x4c9   :  { %1471 = vmatprep.subr.mxu0 %v3968_v12  ;;  %2734 = vmatprep.subr.mxu1 %v4407_v5 }
 0x4ca   :  { %1472 = vmatpush1.msra.mxu0 %v3972_v40  ;;  %2735 = vmatpush3.msra.mxu1 %v4422_v11 }
 0x4cb   :  { %1473 = vmatprep.subr.mxu0 %v3976_v15  ;;  %2736 = vmatprep.subr.mxu1 %v4407_v5 }
 0x4cc   :  { %1474 = vmatpush1.msra.mxu0 %v3980_v42  ;;  %1507 = vmatprep.mubr.f32.mxu0 %v4407_v5 }
 0x4cd   :  { %2737 = vmatpush3.msra.mxu1 %v4425_v17  ;;  %2738 = vmatprep.mubr.msk.f32.mxu1 %vm3096_vm2, %v4407_v5  ;;  %v4439_v17 = vld [vmem:[#allocation33_spill] sm:$0xff] }
 0x4ce   :  { %1606 = vmatprep.subr.mxu0 %v3767_v18  ;;  %2741 = vmatprep.subr.mxu1 %v4407_v5 }
 0x56d   :  { %v1346_v21 = vpop.f32.mrf.mxu0  ;;  %v1417_v11 = vpop.f32.mrf.mxu1 }
 0x56e   :  { %v1347_v43 = vadd.f32 %v1346_v21, %v4426_v23  ;;  %v1418_v16 = vadd.f32 %v1417_v11, %v3615_v57  ;;  %v4001_v11 = vld [vmem:[#allocation5 + $0x178] sm:$0xff] }
 0x56f   :  { %v1348_v44 = vpop.f32.mrf.mxu0  ;;  %v2705_v46 = vpop.f32.mrf.mxu1 }
 0x570   :  { %v1421_v49 = vadd.f32 %v1347_v43, %v4438_v48  ;;  %v1349_v36 = vadd.f32 %v1348_v44, %v3609_v27  ;;  %v4007_v46 = vld [vmem:[#allocation5 + $0x160] sm:$0xff]  ;;  %v4013_v48 = vld [vmem:[#allocation5 + $0x148] sm:$0xff] }
 0x572   :  { %v2259_v50 = vmul.f32 -1.442695, %v1421_v49  ;;  %v1428_v28 = vadd.f32 %v1349_v36, %v4439_v17  ;;  %v4019_v49 = vld [vmem:[#allocation5 + $0x130] sm:$0xff]  ;;  %v4031_v36 = vld [vmem:[#allocation5 + $0x100] sm:$0xff]  ;;  %v4037_v17 = vld [vmem:[#allocation5 + $0xe8] sm:$0xff] }
 0x574   :  { %2929 = vpow2.f32 %v2259_v50  ;;  %v2260_v10 = vmul.f32 -1.442695, %v1428_v28  ;;  %v4025_v50 = vld [vmem:[#allocation5 + $0x118] sm:$0xff]  ;;  %v4043_v28 = vld [vmem:[#allocation5 + $0xd0] sm:$0xff] }
 0x576   :  { %2931 = vpow2.f32 %v2260_v10  ;;  %v4049_v10 = vld [vmem:[#allocation5 + $0xb8] sm:$0xff] }
 0x581   :  { %v2930_v13 = vpop.eup %2929 }
 0x582   :  { %v1425_v14 = vadd.f32 1.0, %v2930_v13  ;;  %v4055_v13 = vld [vmem:[#allocation5 + $0xa0] sm:$0xff] }
 0x583   :  { %v2932_v1 = vpop.eup %2931 }
 0x584   :  { %2933 = vrcp.f32 %v1425_v14  ;;  %v1432_v53 = vadd.f32 1.0, %v2932_v1  ;;  %v4061_v14 = vld [vmem:[#allocation5 + $0x88] sm:$0xff]  ;;  %v4067_v1 = vld [vmem:[#allocation5 + $0x70] sm:$0xff] }
 0x586   :  { %2935 = vrcp.f32 %v1432_v53  ;;  %v4073_v53 = vld [vmem:[#allocation5 + $0x58] sm:$0xff] }
 0x591   :  { %v2934_v47 = vpop.eup %2933 }
 0x592   :  { %v1435_v37 = vmul.f32 %v2934_v47, %v1418_v16  ;;  %v4079_v16 = vld [vmem:[#allocation5 + $0x40] sm:$0xff]  ;;  %v4085_v47 = vld [vmem:[#allocation5 + $0x28] sm:$0xff] }
 0x593   :  { %v2936_v60 = vpop.eup %2935  ;;  %4441 = vst [vmem:[#allocation21_spill] sm:$0xff] %v4085_v47 }
 0x594   :  { %v1436_v45 = vadd.f32 %v1435_v37, %v4440_v30  ;;  %v1438_v19 = vsub.f32 1.0, %v2936_v60  ;;  %v1440_v43 = vmul.f32 %v2936_v60, %v3886_v39  ;;  %v4092_v37 = vld [vmem:[#allocation5 + $0x10] sm:$0xff] }
 0x595   :  { %4442 = vst [vmem:[#allocation14_spill] sm:$0xff] %v4092_v37 }
 0x596   :  { %2937 = vtanh.f32 %v1436_v45 }
 0x5a3   :  { %v2938_v35 = vpop.eup %2937 }
 0x5a4   :  { %v1439_v21 = vmul.f32 %v2938_v35, %v1438_v19 }
 0x5a6   :  { %v3996_v44 = vadd.f32 %v1440_v43, %v1439_v21  ;;  %v4443_v21 = vld [vmem:[#allocation35_spill] sm:$0xff] }
 0x5a8   :  { %1508 = vmatmul.mubr.f32.vlgmr.msra.gmra.mxu0 %v3996_v44  ;;  %2739 = vmatmul.mubr.f32.vlgmr.msra.gmra.mxu1 %v3996_v44 }
 0x5a9   :  { %1607 = vmatpush1.msra.mxu0 %v3782_v25  ;;  %2742 = vmatpush3.msra.mxu1 %v4001_v11 }
 0x5aa   :  { %1608 = vmatprep.subr.mxu0 %v3786_v20  ;;  %2743 = vmatprep.subr.mxu1 %v4407_v5 }
 0x5ab   :  { %1609 = vmatpush1.msra.mxu0 %v3790_v26  ;;  %2744 = vmatpush3.msra.mxu1 %v4007_v46 }
 0x5ac   :  { %1610 = vmatprep.subr.mxu0 %v3794_v29  ;;  %2745 = vmatprep.subr.mxu1 %v4407_v5 }
 0x5ad   :  { %1611 = vmatpush1.msra.mxu0 %v3798_v31  ;;  %2746 = vmatpush3.msra.mxu1 %v4013_v48 }
 0x5ae   :  { %1612 = vmatprep.subr.mxu0 %v3802_v32  ;;  %2747 = vmatprep.subr.mxu1 %v4407_v5 }
 0x5af   :  { %1613 = vmatpush1.msra.mxu0 %v3806_v52  ;;  %2748 = vmatpush3.msra.mxu1 %v4019_v49 }
 0x5b0   :  { %1614 = vmatprep.subr.mxu0 %v3810_v54  ;;  %2749 = vmatprep.subr.mxu1 %v4407_v5 }
 0x5b1   :  { %1615 = vmatpush1.msra.mxu0 %v3814_v22  ;;  %2750 = vmatpush3.msra.mxu1 %v4025_v50 }
 0x5b2   :  { %1616 = vmatprep.subr.mxu0 %v3818_v34  ;;  %2751 = vmatprep.subr.mxu1 %v4407_v5 }
 0x5b3   :  { %1617 = vmatpush1.msra.mxu0 %v3822_v33  ;;  %2752 = vmatpush3.msra.mxu1 %v4031_v36 }
 0x5b4   :  { %1618 = vmatprep.subr.mxu0 %v3826_v55  ;;  %2753 = vmatprep.subr.mxu1 %v4407_v5 }
 0x5b5   :  { %1619 = vmatpush1.msra.mxu0 %v3830_v51  ;;  %2754 = vmatpush3.msra.mxu1 %v4037_v17 }
 0x5b6   :  { %1620 = vmatprep.subr.mxu0 %v3834_v58  ;;  %2755 = vmatprep.subr.mxu1 %v4407_v5 }
 0x5b7   :  { %1621 = vmatpush1.msra.mxu0 %v3838_v59  ;;  %2756 = vmatpush3.msra.mxu1 %v4043_v28 }
 0x5b8   :  { %1622 = vmatprep.subr.mxu0 %v3920_v61  ;;  %2757 = vmatprep.subr.mxu1 %v4407_v5 }
 0x5b9   :  { %1623 = vmatpush1.msra.mxu0 %v3924_v62  ;;  %2758 = vmatpush3.msra.mxu1 %v4049_v10 }
 0x5ba   :  { %1624 = vmatprep.subr.mxu0 %v3928_v63  ;;  %2759 = vmatprep.subr.mxu1 %v4407_v5 }
 0x5bb   :  { %1625 = vmatpush1.msra.mxu0 %v3932_v0  ;;  %2760 = vmatpush3.msra.mxu1 %v4055_v13 }
 0x5bc   :  { %1626 = vmatprep.subr.mxu0 %v3936_v2  ;;  %2761 = vmatprep.subr.mxu1 %v4407_v5 }
 0x5bd   :  { %1627 = vmatpush1.msra.mxu0 %v3940_v3  ;;  %2762 = vmatpush3.msra.mxu1 %v4061_v14 }
 0x5be   :  { %1628 = vmatprep.subr.mxu0 %v3944_v4  ;;  %2763 = vmatprep.subr.mxu1 %v4407_v5 }
 0x5bf   :  { %1629 = vmatpush1.msra.mxu0 %v3948_v6  ;;  %2764 = vmatpush3.msra.mxu1 %v4067_v1 }
 0x5c0   :  { %1630 = vmatprep.subr.mxu0 %v3952_v7  ;;  %2765 = vmatprep.subr.mxu1 %v4407_v5 }
 0x5c1   :  { %1631 = vmatpush1.msra.mxu0 %v3956_v8  ;;  %2766 = vmatpush3.msra.mxu1 %v4073_v53 }
 0x5c2   :  { %1632 = vmatprep.subr.mxu0 %v3960_v9  ;;  %2767 = vmatprep.subr.mxu1 %v4407_v5 }
 0x5c3   :  { %1633 = vmatpush1.msra.mxu0 %v3964_v38  ;;  %2768 = vmatpush3.msra.mxu1 %v4079_v16 }
 0x5c4   :  { %1634 = vmatprep.subr.mxu0 %v3968_v12  ;;  %2769 = vmatprep.subr.mxu1 %v4407_v5 }
 0x5c5   :  { %1635 = vmatpush1.msra.mxu0 %v3972_v40  ;;  %2770 = vmatpush3.msra.mxu1 %v4085_v47 }
 0x5c6   :  { %1636 = vmatprep.subr.mxu0 %v3976_v15  ;;  %2771 = vmatprep.subr.mxu1 %v4407_v5 }
 0x5c7   :  { %1637 = vmatpush1.msra.mxu0 %v3980_v42  ;;  %1670 = vmatprep.mubr.f32.mxu0 %v4407_v5 }
 0x5c8   :  { %2772 = vmatpush3.msra.mxu1 %v4092_v37  ;;  %2773 = vmatprep.mubr.msk.f32.mxu1 %vm3096_vm2, %v4407_v5 }
 0x5c9   :  { %1769 = vmatprep.subr.mxu0 %v3767_v18  ;;  %2776 = vmatprep.subr.mxu1 %v4407_v5 }
 0x668   :  { %v1509_v30 = vpop.f32.mrf.mxu0  ;;  %v1580_v45 = vpop.f32.mrf.mxu1 }
 0x669   :  { %v1510_v60 = vadd.f32 %v1509_v30, %v4426_v23  ;;  %v1581_v40 = vadd.f32 %v1580_v45, %v3615_v57  ;;  %v2023_v45 = vld [vmem:[%s4335_s8 + $0x20] sm:$0xff] }
 0x66a   :  { %v1511_v19 = vpop.f32.mrf.mxu0  ;;  %v2740_v35 = vpop.f32.mrf.mxu1 }
 0x66b   :  { %v1584_v43 = vadd.f32 %v1510_v60, %v4443_v21  ;;  %v1512_v24 = vadd.f32 %v1511_v19, %v3609_v27  ;;  %v4445_v35 = vld [vmem:[#allocation28_spill] sm:$0xff] }
 0x66d   :  { %v2261_v39 = vmul.f32 -1.442695, %v1584_v43  ;;  %v1591_v56 = vadd.f32 %v1512_v24, %v4444_v41  ;;  %v4447_v24 = vld [vmem:[#allocation21_spill] sm:$0xff] }
 0x66f   :  { %2939 = vpow2.f32 %v2261_v39  ;;  %v2262_v37 = vmul.f32 -1.442695, %v1591_v56 }
 0x671   :  { %2941 = vpow2.f32 %v2262_v37  ;;  %v1932_v37 = vld [vmem:[%s4328_s1] sm:$0x3] }
 0x67c   :  { %v2940_v42 = vpop.eup %2939 }
 0x67d   :  { %v1588_v18 = vadd.f32 1.0, %v2940_v42 }
 0x67e   :  { %v2942_v15 = vpop.eup %2941 }
 0x67f   :  { %2943 = vrcp.f32 %v1588_v18  ;;  %v1595_v47 = vadd.f32 1.0, %v2942_v15  ;;  %v2022_v18 = vld [vmem:[%s4335_s8 + $0x18] sm:$0xff] }
 0x681   :  { %2945 = vrcp.f32 %v1595_v47  ;;  %v1933_v47 = vld [vmem:[%s4333_s6] sm:$0xff] }
 0x68c   :  { %v2944_v30 = vpop.eup %2943 }
 0x68d   :  { %v1598_v23 = vmul.f32 %v2944_v30, %v1581_v40  ;;  %v2021_v30 = vld [vmem:[%s4335_s8 + $0x10] sm:$0xff] }
 0x68e   :  { %v2946_v21 = vpop.eup %2945 }
 0x68f   :  { %v1599_v60 = vadd.f32 %v1598_v23, %v4445_v35  ;;  %v1601_v19 = vsub.f32 1.0, %v2946_v21  ;;  %v1603_v56 = vmul.f32 %v2946_v21, %v3996_v44  ;;  %v4446_v23 = vld [vmem:[#allocation11_spill] sm:$0xff] }
 0x690   :  { %v2020_v35 = vld [vmem:[%s4335_s8 + $0x8] sm:$0xff] }
 0x691   :  { %2947 = vtanh.f32 %v1599_v60  ;;  %v2019_v60 = vld [vmem:[%s4335_s8] sm:$0xff] }
 0x69e   :  { %v2948_v39 = vpop.eup %2947 }
 0x69f   :  { %v1602_v43 = vmul.f32 %v2948_v39, %v1601_v19 }
 0x6a1   :  { %v4106_v41 = vadd.f32 %v1603_v56, %v1602_v43 }
 0x6a3   :  { %1671 = vmatmul.mubr.f32.vlgmr.msra.gmra.mxu0 %v4106_v41  ;;  %2774 = vmatmul.mubr.f32.vlgmr.msra.gmra.mxu1 %v4106_v41 }
 0x6a4   :  { %1770 = vmatpush1.msra.mxu0 %v3782_v25  ;;  %2777 = vmatpush3.msra.mxu1 %v4001_v11  ;;  %v4448_v25 = vld [vmem:[#allocation20_spill] sm:$0xff]  ;;  %v2034_v11 = vld [vmem:[%s4335_s8 + $0x78] sm:$0xff] }
 0x6a5   :  { %1771 = vmatprep.subr.mxu0 %v3786_v20  ;;  %2778 = vmatprep.subr.mxu1 %v4407_v5  ;;  %v4449_v20 = vld [vmem:[#allocation22_spill] sm:$0xff] }
 0x6a6   :  { %1772 = vmatpush1.msra.mxu0 %v3790_v26  ;;  %2779 = vmatpush3.msra.mxu1 %v4007_v46  ;;  %v4450_v26 = vld [vmem:[#allocation14_spill] sm:$0xff]  ;;  %v2033_v46 = vld [vmem:[%s4335_s8 + $0x70] sm:$0xff] }
 0x6a7   :  { %1773 = vmatprep.subr.mxu0 %v3794_v29  ;;  %2780 = vmatprep.subr.mxu1 %v4407_v5 }
 0x6a8   :  { %1774 = vmatpush1.msra.mxu0 %v3798_v31  ;;  %2781 = vmatpush3.msra.mxu1 %v4013_v48  ;;  %v2032_v48 = vld [vmem:[%s4335_s8 + $0x68] sm:$0xff] }
 0x6a9   :  { %1775 = vmatprep.subr.mxu0 %v3802_v32  ;;  %2782 = vmatprep.subr.mxu1 %v4407_v5  ;;  %v4451_v32 = vld [vmem:[#allocation39_spill] sm:$0xff] }
 0x6aa   :  { %1776 = vmatpush1.msra.mxu0 %v3806_v52  ;;  %2783 = vmatpush3.msra.mxu1 %v4019_v49  ;;  %v2031_v49 = vld [vmem:[%s4335_s8 + $0x60] sm:$0xff] }
 0x6ab   :  { %1777 = vmatprep.subr.mxu0 %v3810_v54  ;;  %2784 = vmatprep.subr.mxu1 %v4407_v5 }
 0x6ac   :  { %1778 = vmatpush1.msra.mxu0 %v3814_v22  ;;  %2785 = vmatpush3.msra.mxu1 %v4025_v50  ;;  %v2030_v50 = vld [vmem:[%s4335_s8 + $0x58] sm:$0xff] }
 0x6ad   :  { %1779 = vmatprep.subr.mxu0 %v3818_v34  ;;  %2786 = vmatprep.subr.mxu1 %v4407_v5  ;;  %v4452_v34 = vld [vmem:[#allocation37_spill] sm:$0xff] }
 0x6ae   :  { %1780 = vmatpush1.msra.mxu0 %v3822_v33  ;;  %2787 = vmatpush3.msra.mxu1 %v4031_v36  ;;  %v2029_v36 = vld [vmem:[%s4335_s8 + $0x50] sm:$0xff] }
 0x6af   :  { %1781 = vmatprep.subr.mxu0 %v3826_v55  ;;  %2788 = vmatprep.subr.mxu1 %v4407_v5 }
 0x6b0   :  { %1782 = vmatpush1.msra.mxu0 %v3830_v51  ;;  %2789 = vmatpush3.msra.mxu1 %v4037_v17  ;;  %v2028_v17 = vld [vmem:[%s4335_s8 + $0x48] sm:$0xff] }
 0x6b1   :  { %1783 = vmatprep.subr.mxu0 %v3834_v58  ;;  %2790 = vmatprep.subr.mxu1 %v4407_v5  ;;  %v4453_v58 = vld [vmem:[#allocation38_spill] sm:$0xff] }
 0x6b2   :  { %1784 = vmatpush1.msra.mxu0 %v3838_v59  ;;  %2791 = vmatpush3.msra.mxu1 %v4043_v28  ;;  %v2027_v28 = vld [vmem:[%s4335_s8 + $0x40] sm:$0xff] }
 0x6b3   :  { %1785 = vmatprep.subr.mxu0 %v3920_v61  ;;  %2792 = vmatprep.subr.mxu1 %v4407_v5 }
 0x6b4   :  { %1786 = vmatpush1.msra.mxu0 %v3924_v62  ;;  %2793 = vmatpush3.msra.mxu1 %v4049_v10  ;;  %v2026_v10 = vld [vmem:[%s4335_s8 + $0x38] sm:$0xff] }
 0x6b5   :  { %1787 = vmatprep.subr.mxu0 %v3928_v63  ;;  %2794 = vmatprep.subr.mxu1 %v4407_v5 }
 0x6b6   :  { %1788 = vmatpush1.msra.mxu0 %v3932_v0  ;;  %2795 = vmatpush3.msra.mxu1 %v4055_v13  ;;  %v1936_v13 = vld [vmem:[%s4333_s6 + $0x18] sm:$0xff] }
 0x6b7   :  { %1789 = vmatprep.subr.mxu0 %v3936_v2  ;;  %2796 = vmatprep.subr.mxu1 %v4407_v5 }
 0x6b8   :  { %1790 = vmatpush1.msra.mxu0 %v3940_v3  ;;  %2797 = vmatpush3.msra.mxu1 %v4061_v14  ;;  %v1935_v14 = vld [vmem:[%s4333_s6 + $0x10] sm:$0xff] }
 0x6b9   :  { %1791 = vmatprep.subr.mxu0 %v3944_v4  ;;  %2798 = vmatprep.subr.mxu1 %v4407_v5 }
 0x6ba   :  { %1792 = vmatpush1.msra.mxu0 %v3948_v6  ;;  %2799 = vmatpush3.msra.mxu1 %v4067_v1  ;;  %v2025_v1 = vld [vmem:[%s4335_s8 + $0x30] sm:$0xff] }
 0x6bb   :  { %1793 = vmatprep.subr.mxu0 %v3952_v7  ;;  %2800 = vmatprep.subr.mxu1 %v4407_v5  ;;  %v4454_v7 = vld [vmem:[#allocation34_spill] sm:$0xff] }
 0x6bc   :  { %1794 = vmatpush1.msra.mxu0 %v3956_v8  ;;  %2801 = vmatpush3.msra.mxu1 %v4073_v53  ;;  %v1934_v53 = vld [vmem:[%s4333_s6 + $0x8] sm:$0xff] }
 0x6bd   :  { %1795 = vmatprep.subr.mxu0 %v3960_v9  ;;  %2802 = vmatprep.subr.mxu1 %v4407_v5 }
 0x6be   :  { %1796 = vmatpush1.msra.mxu0 %v3964_v38  ;;  %2803 = vmatpush3.msra.mxu1 %v4079_v16  ;;  %v2024_v16 = vld [vmem:[%s4335_s8 + $0x28] sm:$0xff] }
 0x6bf   :  { %1797 = vmatprep.subr.mxu0 %v3968_v12  ;;  %2804 = vmatprep.subr.mxu1 %v4407_v5 }
 0x6c0   :  { %1798 = vmatpush1.msra.mxu0 %v4446_v23  ;;  %2805 = vmatpush3.msra.mxu1 %v4447_v24  ;;  %v4455_v23 = vld [vmem:[#allocation40_spill] sm:$0xff] }
 0x6c1   :  { %1799 = vmatprep.subr.mxu0 %v4448_v25  ;;  %2806 = vmatprep.subr.mxu1 %v4407_v5 }
 0x6c2   :  { %1800 = vmatpush1.msra.mxu0 %v4449_v20  ;;  %1833 = vmatprep.mubr.f32.mxu0 %v4407_v5 }
 0x6c3   :  { %2807 = vmatpush3.msra.mxu1 %v4450_v26  ;;  %2808 = vmatprep.mubr.msk.f32.mxu1 %vm3096_vm2, %v4407_v5  ;;  %v4456_v26 = vld [vmem:[#allocation41_spill] sm:$0xff] }
 0x6c4   :  { %2822 = vmatprep.subr.mxu0 %v4407_v5  ;;  %2811 = vmatprep.subr.mxu1 %v4407_v5 }
 0x763   :  { %v1672_v29 = vpop.f32.mrf.mxu0  ;;  %v1743_v31 = vpop.f32.mrf.mxu1 }
 0x764   :  { %v1673_v52 = vadd.f32 %v1672_v29, %v4451_v32  ;;  %v1744_v3 = vadd.f32 %v1743_v31, %v3615_v57 }
 0x765   :  { %v1674_v54 = vpop.f32.mrf.mxu0  ;;  %v2775_v22 = vpop.f32.mrf.mxu1 }
 0x766   :  { %v1747_v33 = vadd.f32 %v1673_v52, %v4452_v34  ;;  %v1675_v51 = vadd.f32 %v1674_v54, %v3609_v27 }
 0x768   :  { %v2263_v55 = vmul.f32 -1.442695, %v1747_v33  ;;  %v1754_v59 = vadd.f32 %v1675_v51, %v4453_v58  ;;  %v4457_v51 = vld [vmem:[#allocation32_spill] sm:$0xff] }
 0x76a   :  { %2949 = vpow2.f32 %v2263_v55  ;;  %v2264_v61 = vmul.f32 -1.442695, %v1754_v59 }
 0x76c   :  { %2951 = vpow2.f32 %v2264_v61  ;;  %v4459_v61 = vld [vmem:[#allocation43_spill] sm:$0xff] }
 0x777   :  { %v2950_v62 = vpop.eup %2949 }
 0x778   :  { %v1751_v63 = vadd.f32 1.0, %v2950_v62 }
 0x779   :  { %v2952_v0 = vpop.eup %2951 }
 0x77a   :  { %2953 = vrcp.f32 %v1751_v63  ;;  %v1758_v2 = vadd.f32 1.0, %v2952_v0  ;;  %v4460_v63 = vld [vmem:[#allocation12_spill] sm:$0xff] }
 0x77c   :  { %2955 = vrcp.f32 %v1758_v2 }
 0x787   :  { %v2954_v4 = vpop.eup %2953 }
 0x788   :  { %v1761_v6 = vmul.f32 %v2954_v4, %v1744_v3 }
 0x789   :  { %v2956_v9 = vpop.eup %2955 }
 0x78a   :  { %v1762_v8 = vadd.f32 %v1761_v6, %v4454_v7  ;;  %v1764_v38 = vsub.f32 1.0, %v2956_v9  ;;  %v1766_v15 = vmul.f32 %v2956_v9, %v4106_v41  ;;  %v4462_v6 = vld [vmem:[#allocation13_spill] sm:$0xff] }
 0x78c   :  { %2957 = vtanh.f32 %v1762_v8 }
 0x799   :  { %v2958_v12 = vpop.eup %2957 }
 0x79a   :  { %v1765_v40 = vmul.f32 %v2958_v12, %v1764_v38 }
 0x79c   :  { %v4184_v42 = vadd.f32 %v1766_v15, %v1765_v40 }
 0x79e   :  { %1834 = vmatmul.mubr.f32.vlgmr.msra.gmra.mxu0 %v4184_v42  ;;  %2809 = vmatmul.mubr.f32.vlgmr.msra.gmra.mxu1 %v4184_v42 }
 0x79f   :  { %2819 = vmatprep.mubr.msk.f32.mxu1 %vm3096_vm2, %v4407_v5  ;;  %2854 = vmatprep.mubr.msk.f32.mxu0 %vm3096_vm2, %v4407_v5 }
 0x7a0   :  { %2823 = vmatpush3.msra.mxu0 %v2034_v11  ;;  %2812 = vmatpush3.msra.mxu1 %v1936_v13 }
 0x7a1   :  { %2824 = vmatprep.subr.mxu0 %v4407_v5  ;;  %2813 = vmatprep.subr.mxu1 %v4407_v5 }
 0x7a2   :  { %2825 = vmatpush3.msra.mxu0 %v2033_v46  ;;  %2814 = vmatpush3.msra.mxu1 %v1935_v14 }
 0x7a3   :  { %2826 = vmatprep.subr.mxu0 %v4407_v5  ;;  %2815 = vmatprep.subr.mxu1 %v4407_v5 }
 0x7a4   :  { %2827 = vmatpush3.msra.mxu0 %v2032_v48  ;;  %2816 = vmatpush3.msra.mxu1 %v1934_v53 }
 0x7a5   :  { %2828 = vmatprep.subr.mxu0 %v4407_v5  ;;  %2817 = vmatprep.subr.mxu1 %v4407_v5 }
 0x7a6   :  { %2829 = vmatpush3.msra.mxu0 %v2031_v49  ;;  %2818 = vmatpush3.msra.mxu1 %v1933_v47  ;;  %v2118_v49 = vld [vmem:[%s4337_s10 + $0x18] sm:$0xff] }
 0x7a7   :  { %2830 = vmatprep.subr.mxu0 %v4407_v5  ;;  %2820 = vmatmul.mubr.msk.f32.vlgmr.msra.gmra.mxu1 %vm1944_vm3, %v1932_v37 }
 0x7a8   :  { %2831 = vmatpush3.msra.mxu0 %v2030_v50  ;;  %2857 = vmatprep.subr.mxu1 %v4407_v5  ;;  %v2267_v50 = vld [vmem:[%s4334_s7] ss:$0 sm:$0xff]  ;;  %s3097_s7 = smov [#allocation7]  }
 0x7a9   :  { %2832 = vmatprep.subr.mxu0 %v4407_v5  ;;  %2865 = vmatprep.mubr.msk.f32.mxu1 %vm3096_vm2, %v4407_v5  ;;  %s2207_s17 = sshll.u32 %s3097_s7, 4  ;;  %s2208_s17 = int_to_ptr.vmem [resolvable:$true] %s2207_s17 }
 0x7aa   :  { %2833 = vmatpush3.msra.mxu0 %v2029_v36  ;;  %2858 = vmatpush3.msra.mxu1 %v2118_v49  ;;  %p3068_p11 = scmp.lt.s32.totalorder %s2208_s17, %s2208_s17 }
 0x7ab   :  { %2834 = vmatprep.subr.mxu0 %v4407_v5  ;;  %2859 = vmatprep.subr.mxu1 %v4407_v5 }
 0x7ac   :  { %2835 = vmatpush3.msra.mxu0 %v2028_v17  ;;  %v2269_v17 = vld [vmem:[%s4336_s9] ss:$0 sm:$0xff]  ;;  %s3063_s9 = scalar_lea.vmem %s2208_s17, 32 }
 0x7ad   :  { %2836 = vmatprep.subr.mxu0 %v4407_v5  ;;  %p3064_p10 = scmp.ne.s32.totalorder %s2208_s17, %s3063_s9  ;;  %p3069_p12 = scmp.lt.s32.totalorder %s3063_s9, %s3063_s9 }
 0x7ae   :  { %2837 = vmatpush3.msra.mxu0 %v2027_v28 }
 0x7af   :  { %2838 = vmatprep.subr.mxu0 %v4407_v5  ;;  %p3070_p13 = por %p3069_p12, %p3068_p11 }
 0x7b0   :  { %2839 = vmatpush3.msra.mxu0 %v2026_v10 }
 0x7b1   :  { %2840 = vmatprep.subr.mxu0 %v4407_v5  ;;  %p3071_p0 = pnand %p3070_p13, %p3064_p10 }
 0x7b2   :  { %2841 = vmatpush3.msra.mxu0 %v2025_v1 }
 0x7b3   :  { %2842 = vmatprep.subr.mxu0 %v4407_v5 }
 0x7b4   :  { %2843 = vmatpush3.msra.mxu0 %v2024_v16  ;;  %v2270_v16 = vld [vmem:[%s4338_s11] ss:$0 sm:$0xff] }
 0x7b5   :  { %2844 = vmatprep.subr.mxu0 %v4407_v5 }
 0x7b6   :  { %2845 = vmatpush3.msra.mxu0 %v2023_v45 }
 0x7b7   :  { %2846 = vmatprep.subr.mxu0 %v4407_v5 }
 0x7b8   :  { %2847 = vmatpush3.msra.mxu0 %v2022_v18 }
 0x7b9   :  { %2848 = vmatprep.subr.mxu0 %v4407_v5 }
 0x7ba   :  { %2849 = vmatpush3.msra.mxu0 %v2021_v30 }
 0x7bb   :  { %2850 = vmatprep.subr.mxu0 %v4407_v5 }
 0x7bc   :  { %2851 = vmatpush3.msra.mxu0 %v2020_v35 }
 0x7bd   :  { %2852 = vmatprep.subr.mxu0 %v4407_v5 }
 0x7be   :  { %2853 = vmatpush3.msra.mxu0 %v2019_v60 }
 0x85e   :  { %v1835_v21 = vpop.f32.mrf.mxu0  ;;  %v1906_v19 = vpop.f32.mrf.mxu1 }
 0x85f   :  { %v1836_v39 = vadd.f32 %v1835_v21, %v4451_v32  ;;  %v1907_v33 = vadd.f32 %v1906_v19, %v3615_v57  ;;  %v4461_v57 = vld [vmem:[#allocation17_spill] sm:$0xff] }
 0x860   :  { %v1837_v43 = vpop.f32.mrf.mxu0  ;;  %v2810_v56 = vpop.f32.mrf.mxu1 }
 0x861   :  { %v1910_v24 = vadd.f32 %v1836_v39, %v4455_v23  ;;  %v1838_v20 = vadd.f32 %v1837_v43, %v3609_v27  ;;  %v4458_v27 = vld [vmem:[#allocation42_spill] sm:$0xff] }
 0x862   :  { %vm555_vm4 = vcmp.eq.f32.partialorder %v4458_v27, 1.0  ;;  %vm556_vm5 = vcmp.eq.f32.partialorder %v4458_v27, 2.0  ;;  %vm557_vm6 = vcmp.eq.f32.partialorder %v4458_v27, 3.0  ;;  %vm558_vm7 = vcmp.eq.f32.partialorder %v4458_v27, 4.0 }
 0x863   :  { %v2265_v25 = vmul.f32 -1.442695, %v1910_v24  ;;  %v1917_v29 = vadd.f32 %v1838_v20, %v4456_v26  ;;  %v790_v62 = vsel %vm555_vm4, %v4459_v61, 0.0  ;;  %vm559_vm8 = vcmp.eq.f32.partialorder %v4458_v27, 5.0 }
 0x864   :  { %v953_v0 = vsel %vm556_vm5, %v4460_v63, %v790_v62  ;;  %vm560_vm9 = vcmp.eq.f32.partialorder %v4458_v27, 6.0  ;;  %vm561_vm10 = vcmp.eq.f32.partialorder %v4458_v27, 7.0  ;;  %vm562_vm11 = vcmp.eq.f32.partialorder %v4458_v27, 8.0 }
 0x865   :  { %2959 = vpow2.f32 %v2265_v25  ;;  %v2266_v31 = vmul.f32 -1.442695, %v1917_v29  ;;  %v1116_v4 = vsel %vm557_vm6, %v4461_v57, %v953_v0 }
 0x866   :  { %v1279_v7 = vsel %vm558_vm7, %v4462_v6, %v1116_v4 }
 0x867   :  { %2961 = vpow2.f32 %v2266_v31  ;;  %v1442_v38 = vsel %vm559_vm8, %v3996_v44, %v1279_v7  ;;  %v2014_v46 = vpop.f32.mrf.mxu1  ;;  %v2117_v44 = vld [vmem:[%s4337_s10 + $0x10] sm:$0xff] }
 0x868   :  { %v1605_v12 = vsel %vm560_vm9, %v4106_v41, %v1442_v38  ;;  %v2116_v41 = vld [vmem:[%s4337_s10 + $0x8] sm:$0xff]  ;;  %2860 = vmatpush3.msra.mxu1 %v2117_v44  ;;  %v2015_v36 = vadd.f32 %v2267_v50, %v2014_v46 }
 0x869   :  { %v1768_v15 = vsel %vm561_vm10, %v4184_v42, %v1605_v12  ;;  %v2821_v48 = vpop.f32.mrf.mxu1  ;;  %2861 = vmatprep.subr.mxu1 %v4407_v5 }
 0x86a   :  { %2862 = vmatpush3.msra.mxu1 %v2116_v41 }
 0x86b   :  { %2863 = vmatprep.subr.mxu1 %v4407_v5 }
 0x872   :  { %v2960_v52 = vpop.eup %2959 }
 0x873   :  { %v1914_v54 = vadd.f32 1.0, %v2960_v52 }
 0x874   :  { %v2962_v22 = vpop.eup %2961 }
 0x875   :  { %2963 = vrcp.f32 %v1914_v54  ;;  %v1921_v34 = vadd.f32 1.0, %v2962_v22 }
 0x877   :  { %2965 = vrcp.f32 %v1921_v34 }
 0x882   :  { %v2964_v32 = vpop.eup %2963 }
 0x883   :  { %v1924_v55 = vmul.f32 %v2964_v32, %v1907_v33 }
 0x884   :  { %v2966_v59 = vpop.eup %2965 }
 0x885   :  { %v1925_v58 = vadd.f32 %v1924_v55, %v4457_v51  ;;  %v1927_v2 = vsub.f32 1.0, %v2966_v59  ;;  %v1929_v9 = vmul.f32 %v2966_v59, %v4184_v42  ;;  %v2115_v42 = vld [vmem:[%s4337_s10] sm:$0xff] }
 0x886   :  { %2864 = vmatpush3.msra.mxu1 %v2115_v42 }
 0x887   :  { %2967 = vtanh.f32 %v1925_v58 }
 0x888   :  { %2969 = vtanh.f32 %v2015_v36 }
 0x894   :  { %v2968_v3 = vpop.eup %2967 }
 0x895   :  { %v1928_v8 = vmul.f32 %v2968_v3, %v1927_v2  ;;  %v2970_v14 = vpop.eup %2969 }
 0x897   :  { %v1930_v40 = vadd.f32 %v1929_v9, %v1928_v8 }
 0x899   :  { %v1931_v11 = vsel %vm562_vm11, %v1930_v40, %v1768_v15 }
 0x89a   :  { %2855 = vmatmul.mubr.f32.vlgmr.msra.gmra.mxu0 %v1931_v11 }
 0x95a   :  { %v2108_v28 = vpop.f32.mrf.mxu0 }
 0x95b   :  { %v2109_v10 = vadd.f32 %v2269_v17, %v2108_v28 }
 0x95c   :  { %v2856_v13 = vpop.f32.mrf.mxu0 }
 0x95d   :  { %2971 = vtanh.f32 %v2109_v10 }
 0x96a   :  { %v2972_v1 = vpop.eup %2971 }
 0x96b   :  { %v2113_v53 = vmul.f32 %v2972_v1, %v2970_v14 }
 0x96d   :  { %2973 = vtanh.f32 %v2113_v53 }
 0x97a   :  { %v2974_v5 = vpop.eup %2973 }
 0x97b   :  { %2866 = vmatmul.mubr.msk.f32.vlgmr.msra.gmra.mxu1 %vm1944_vm3, %v2974_v5 }
 0xa3b   :  { %v2195_v47 = vpop.f32.mrf.mxu1 }
 0xa3c   :  { %v2196_v37 = vadd.f32 %v2270_v16, %v2195_v47 }
 0xa3d   :  { %v2867_v45 = vpop.f32.mrf.mxu1 }
 0xa3e   :  { %2200 = vst.msk [vmem:[#allocation7] sm:$0x3] %vm2199_vm12, %v2196_v37 }
 0xa3f   :  { %3074 = shalt.err (!%p3071_p0)
}
 0xa40   :  { %2210 = dma.vmem_to_hbm [thread:$0]  %s2208_s17, 32, %s4339_s12, [#allocation4]  }
 0xa41   :  { %3087 = dma.done.wait [#allocation4], 32  }
 0xa42   :  { %3088 = vsyncadd [#allocation4], 4294967264 }
 0xa43   :  { %2214 = vsyncpa [#allocation3], 1 }
 0xa44   :  { %2215 = vsyncpa [#allocation6], 1 }
 0xa45   :  { %2216 = vsyncpa [#allocation4], 1 }

</bundles_post_ra>
